<compile_context>
chip_gen: v5e
topology: v5e:2x2
jax: 0.10.0
libtpu: 0.0.40
codegen_flags: <defaults>
</compile_context>

<pallas_src>
import functools
import itertools
import math

import numpy as np
import jax
import jax.numpy as jnp
from jax import lax
from jax.experimental import pallas as pl
from jax.experimental.pallas import tpu as pltpu

# -----------------------------------------------------------------------------
# Config (copied from the PyTorch module)
# -----------------------------------------------------------------------------
VOC = {'num_classes': 21, 'feature_maps': [38, 19, 10, 5, 3, 1], 'min_dim': 300,
       'steps': [8, 16, 32, 64, 100, 300],
       'min_sizes': [30, 60, 111, 162, 213, 264],
       'max_sizes': [60, 111, 162, 213, 264, 315],
       'aspect_ratios': [[2], [2, 3], [2, 3], [2, 3], [2], [2]],
       'variance': [0.1, 0.2], 'clip': True, 'name': 'VOC'}
MBOX300 = [4, 6, 6, 6, 4, 4]
VGG300 = [64, 64, 'MaxPooling', 128, 128, 'MaxPooling', 256, 256, 256,
          'MaxPooling_Ceil', 512, 512, 512, 'MaxPooling', 512, 512, 512]


def _rup(x, m):
    return (x + m - 1) // m * m


def _cdiv(a, b):
    return -(-a // b)


# -----------------------------------------------------------------------------
# Generation-aware VMEM budget (v5e/v6e: 128 MiB physical, v7x: 64 MiB per-TC)
# -----------------------------------------------------------------------------
def _query_vmem_capacity():
    try:
        fn = getattr(pltpu, "get_tpu_info", None)
        if fn is not None:
            cap = int(getattr(fn(), "vmem_capacity_bytes", 0))
            if cap > 0:
                return cap
    except Exception:
        pass
    return 128 * 1024 * 1024


_VMEM_CAP = _query_vmem_capacity()
_VMEM_BUDGET = min(28 * 1024 * 1024, (_VMEM_CAP * 5) // 16)   # tile-size budget
_VMEM_LIMIT = min(64 * 1024 * 1024, (_VMEM_CAP * 3) // 4)     # scoped limit

_MAX_TK = 4608          # K tile cap (whole-K tiles below this: covers fc6)
_MAX_TN = 512           # N tile cap


# -----------------------------------------------------------------------------
# Pallas kernel 1: tiled matmul (bf16 in, f32 acc) + bias + optional ReLU
# -----------------------------------------------------------------------------
def _mm_kernel(x_ref, w_ref, b_ref, o_ref, acc_ref, *, relu):
    @pl.when(pl.program_id(2) == 0)
    def _():
        acc_ref[...] = jnp.zeros_like(acc_ref)

    acc_ref[...] += jnp.dot(x_ref[...], w_ref[...],
                            preferred_element_type=jnp.float32)

    @pl.when(pl.program_id(2) == pl.num_programs(2) - 1)
    def _():
        r = acc_ref[...] + b_ref[...]
        if relu:
            r = jnp.maximum(r, 0.0)
        o_ref[...] = r.astype(o_ref.dtype)


# module-level partials so repeated identical layer shapes hit the jit cache
_MM_KERNEL_RELU = functools.partial(_mm_kernel, relu=True)
_MM_KERNEL_LINEAR = functools.partial(_mm_kernel, relu=False)


def _choose_tiles(M, K, N, out_itemsize):
    """Adaptive tile selection under the generation-aware VMEM budget."""
    # N tiling: whole-N block when it fits (block dim == full dim is legal,
    # so no N padding for N <= _MAX_TN).
    if N <= _MAX_TN:
        Np, tn = N, N
    else:
        Np = _rup(N, 128)
        tn = _MAX_TN
        while Np % tn:
            tn -= 128

    # K tiling: whole-K block (no padding) whenever K fits the cap.
    if K <= _MAX_TK:
        Kp, tk = K, K
    else:
        Kp = _rup(K, 128)
        tk = min(_MAX_TK, Kp)
        tk -= tk % 128
        while Kp % tk:
            tk -= 128

    def vbytes(tm_, tn_):
        # bf16 x/w double-buffered, out double-buffered, f32 accumulator
        return (2 * tm_ * tk * 2 + 2 * tk * tn_ * 2 +
                2 * tm_ * tn_ * out_itemsize + tm_ * tn_ * 4 + 4 * tn_ + 4096)

    tm = 1024
    while tm > 128 and vbytes(tm, tn) > _VMEM_BUDGET:
        tm //= 2
    tm = min(tm, _rup(M, 8))

    # v7x megacore: if the M axis collapses to one block, split N so a
    # 'parallel' grid axis still has extent >= 2.
    if _cdiv(M, tm) == 1 and Np // tn == 1 and Np % 256 == 0:
        tn = Np // 2
    return tm, tk, tn, Kp, Np


@functools.partial(jax.jit, static_argnames=("relu", "out_dtype"))
def matmul_bias(x, w, b, *, relu, out_dtype=jnp.float32):
    """y = x @ w + b (optional ReLU).  x:(M,K), w:(K,N), b:(N,) -> (M,N)."""
    M, K = x.shape
    N = w.shape[1]
    out_itemsize = jnp.dtype(out_dtype).itemsize
    tm, tk, tn, Kp, Np = _choose_tiles(M, K, N, out_itemsize)

    M_out = M
    if M < 8:                                   # keep block 2nd-minor dim >= 8
        x = jnp.pad(x, ((0, 8 - M), (0, 0)))
        M = 8
    if Kp != K:
        x = jnp.pad(x, ((0, 0), (0, Kp - K)))
        w = jnp.pad(w, ((0, Kp - K), (0, 0)))
    if Np != N:
        w = jnp.pad(w, ((0, 0), (0, Np - N)))
        b = jnp.pad(b, (0, Np - N))

    x = x.astype(jnp.bfloat16)
    w = w.astype(jnp.bfloat16)
    b2 = b.reshape(1, Np).astype(jnp.float32)

    kern = _MM_KERNEL_RELU if relu else _MM_KERNEL_LINEAR
    out = pl.pallas_call(
        kern,
        out_shape=jax.ShapeDtypeStruct((M, Np), out_dtype),
        grid=(pl.cdiv(M, tm), Np // tn, Kp // tk),
        in_specs=[pl.BlockSpec((tm, tk), lambda i, j, k: (i, k)),
                  pl.BlockSpec((tk, tn), lambda i, j, k: (k, j)),
                  pl.BlockSpec((1, tn), lambda i, j, k: (0, j))],
        out_specs=pl.BlockSpec((tm, tn), lambda i, j, k: (i, j)),
        scratch_shapes=[pltpu.VMEM((tm, tn), jnp.float32)],
        compiler_params=pltpu.CompilerParams(
            dimension_semantics=("parallel", "parallel", "arbitrary"),
            vmem_limit_bytes=_VMEM_LIMIT),
    )(x, w, b2)

    if M_out != M:
        out = out[:M_out]
    if Np != N:
        out = out[:, :N]
    return out


# -----------------------------------------------------------------------------
# Pallas kernel 2: implicit-GEMM 3x3 conv (stride 1, pad 1, dilation 1)
#   Input is pre-cut into overlapping row bands (2-row halo).  The 9 taps are
#   folded into the K reduction by slicing shifted windows of the VMEM band,
#   so no im2col matrix is ever materialized in HBM.
# -----------------------------------------------------------------------------
def _conv3x3_kernel(x_ref, w_ref, b_ref, o_ref, *, relu):
    # x_ref: (1, th+2, Wp, C)  bf16 band (padded)     Wp = Wo + 2
    # w_ref: (9, C, tn)        bf16 taps, (kh, kw)-major
    # b_ref: (1, tn)           f32
    # o_ref: (1, th, Wo, tn)
    th, Wo, tn = o_ref.shape[1], o_ref.shape[2], o_ref.shape[3]
    C = x_ref.shape[3]
    acc = jnp.zeros((th * Wo, tn), jnp.float32)
    for t in range(9):
        kh, kw = divmod(t, 3)
        xt = x_ref[0, kh:kh + th, kw:kw + Wo, :].reshape(th * Wo, C)
        acc = acc + jnp.dot(xt, w_ref[t], preferred_element_type=jnp.float32)
    r = acc + b_ref[...]
    if relu:
        r = jnp.maximum(r, 0.0)
    o_ref[...] = r.reshape(1, th, Wo, tn).astype(o_ref.dtype)


_CONV3_RELU = functools.partial(_conv3x3_kernel, relu=True)
_CONV3_LINEAR = functools.partial(_conv3x3_kernel, relu=False)


def _choose_band_rows(H, Wo, Wp, C, tn, out_itemsize):
    def vbytes(th_):
        return (2 * (th_ + 2) * Wp * C * 2 +        # input band (double-buffered)
                2 * 9 * C * tn * 2 +                # weight taps
                2 * th_ * Wo * tn * out_itemsize +  # output block
                th_ * Wo * tn * 4 +                 # f32 accumulator
                4 * tn + 8192)

    th = min(H, 64)
    while th > 1 and vbytes(th) > _VMEM_BUDGET:
        th = max(1, th // 2)
    n_blocks = _cdiv(H, th)
    th = _cdiv(H, n_blocks)     # redistribute so the last band has minimal padding
    return th


@functools.partial(jax.jit, static_argnames=("relu", "out_dtype"))
def _conv3x3_call(x, w, b, *, relu, out_dtype):
    """3x3 / stride 1 / pad 1 conv as implicit GEMM.  x: (B,H,W,C) bf16."""
    B, H, W, C = x.shape
    N = w.shape[1]
    out_itemsize = jnp.dtype(out_dtype).itemsize
    Wo = _rup(W, 16)            # pad output width so the (th, Wo) -> th*Wo merge
    Wp = Wo + 2                 # inside the kernel is sublane-aligned for bf16

    tn = N
    th = _choose_band_rows(H, Wo, Wp, C, tn, out_itemsize)
    n_blocks = _cdiv(H, th)
    n_bands = B * n_blocks
    if n_bands == 1 and N % 256 == 0:      # keep both v7x TensorCores busy
        tn = N // 2
        th = _choose_band_rows(H, Wo, Wp, C, tn, out_itemsize)
        n_blocks = _cdiv(H, th)
        n_bands = B * n_blocks

    Hp = n_blocks * th + 2
    xp = jnp.pad(x.astype(jnp.bfloat16),
                 ((0, 0), (1, Hp - H - 1), (1, Wp - W - 1), (0, 0)))
    # Overlapping row bands (halo = 2 rows): ~2/th extra HBM vs the raw
    # activation, instead of the 9x blow-up of materialized im2col.
    bands = [xp[:, i * th:i * th + th + 2] for i in range(n_blocks)]
    xb = jnp.stack(bands, axis=1).reshape(n_bands, th + 2, Wp, C)

    w9 = w.reshape(9, C, N).astype(jnp.bfloat16)
    b2 = b.reshape(1, N).astype(jnp.float32)

    kern = _CONV3_RELU if relu else _CONV3_LINEAR
    out = pl.pallas_call(
        kern,
        out_shape=jax.ShapeDtypeStruct((n_bands, th, Wo, N), out_dtype),
        grid=(n_bands, N // tn),
        in_specs=[pl.BlockSpec((1, th + 2, Wp, C), lambda i, j: (i, 0, 0, 0)),
                  pl.BlockSpec((9, C, tn), lambda i, j: (0, 0, j)),
                  pl.BlockSpec((1, tn), lambda i, j: (0, j))],
        out_specs=pl.BlockSpec((1, th, Wo, tn), lambda i, j: (i, 0, 0, j)),
        compiler_params=pltpu.CompilerParams(
            dimension_semantics=("parallel", "parallel"),
            vmem_limit_bytes=_VMEM_LIMIT),
    )(xb, w9, b2)

    out = out.reshape(B, n_blocks * th, Wo, N)[:, :H, :W, :]
    return out


# -----------------------------------------------------------------------------
# Pallas kernel 3: L2Norm (per-pixel L2 normalization over channels * gamma)
# -----------------------------------------------------------------------------
def _l2norm_kernel(x_ref, g_ref, o_ref):
    x = x_ref[...].astype(jnp.float32)
    ssq = jnp.sum(x * x, axis=-1, keepdims=True)
    norm = jnp.sqrt(ssq) + 1e-10          # matches PyTorch L2Norm (sqrt + eps)
    o_ref[...] = (x / norm * g_ref[...]).astype(o_ref.dtype)


@jax.jit
def l2norm(x_nhwc, gamma):
    B, H, W, C = x_nhwc.shape
    M = B * H * W
    xf = x_nhwc.reshape(M, C)
    tm = min(512, _rup(M, 8))
    out = pl.pallas_call(
        _l2norm_kernel,
        out_shape=jax.ShapeDtypeStruct((M, C), x_nhwc.dtype),
        grid=(pl.cdiv(M, tm),),
        in_specs=[pl.BlockSpec((tm, C), lambda i: (i, 0)),
                  pl.BlockSpec((1, C), lambda i: (0, 0))],
        out_specs=pl.BlockSpec((tm, C), lambda i: (i, 0)),
        compiler_params=pltpu.CompilerParams(
            dimension_semantics=("parallel",),
            vmem_limit_bytes=_VMEM_LIMIT),
    )(xf, gamma.reshape(1, C).astype(jnp.float32))
    return out.reshape(B, H, W, C)


# -----------------------------------------------------------------------------
# Convolution routing: implicit GEMM for 3x3/s1/p1/d1, im2col + matmul otherwise
# -----------------------------------------------------------------------------
def _im2col(x, k, stride, padding, dilation):
    B, H, W, C = x.shape
    xp = jnp.pad(x, ((0, 0), (padding, padding), (padding, padding), (0, 0)))
    Hp, Wp = H + 2 * padding, W + 2 * padding
    eff = dilation * (k - 1) + 1
    Ho = (Hp - eff) // stride + 1
    Wo = (Wp - eff) // stride + 1
    cols = []
    for i in range(k):
        for j in range(k):
            r0, c0 = i * dilation, j * dilation
            patch = xp[:, r0:r0 + (Ho - 1) * stride + 1:stride,
                          c0:c0 + (Wo - 1) * stride + 1:stride, :]
            cols.append(patch)
    patches = jnp.concatenate(cols, axis=-1)   # (B,Ho,Wo, k*k*C), tap-major
    return patches.reshape(B * Ho * Wo, k * k * C), Ho, Wo


@functools.partial(jax.jit,
                   static_argnames=("k", "stride", "padding", "dilation",
                                    "relu", "out_dtype"))
def _conv_gemm_call(x, w, b, *, k, stride, padding, dilation, relu, out_dtype):
    B, H, W, C = x.shape
    x = x.astype(jnp.bfloat16)
    if k == 1 and stride == 1 and padding == 0 and dilation == 1:
        cols, Ho, Wo = x.reshape(B * H * W, C), H, W
    else:
        cols, Ho, Wo = _im2col(x, k, stride, padding, dilation)
    y = matmul_bias(cols, w, b, relu=relu, out_dtype=out_dtype)
    return y.reshape(B, Ho, Wo, -1)


def conv2d(x, p, *, stride=1, padding=0, dilation=1, relu=False,
           out_dtype=jnp.bfloat16):
    B, H, W, C = x.shape
    k = p['k']
    if x.dtype != jnp.bfloat16:
        x = x.astype(jnp.bfloat16)
    if (k == 3 and stride == 1 and padding == 1 and dilation == 1
            and C % 64 == 0 and min(H, W) >= 8):
        return _conv3x3_call(x, p['w'], p['b'], relu=relu, out_dtype=out_dtype)
    return _conv_gemm_call(x, p['w'], p['b'], k=k, stride=stride,
                           padding=padding, dilation=dilation, relu=relu,
                           out_dtype=out_dtype)


# -----------------------------------------------------------------------------
# MaxPool (cheap; plain XLA glue).  Matches PyTorch incl. ceil_mode / -inf pad.
# -----------------------------------------------------------------------------
def maxpool(x, k, stride, padding=0, ceil_mode=False):
    B, H, W, C = x.shape

    def out_size(n):
        eff = n + 2 * padding - k
        if ceil_mode:
            o = -(-eff // stride) + 1
            if (o - 1) * stride >= n + padding:
                o -= 1
        else:
            o = eff // stride + 1
        return o

    Ho, Wo = out_size(H), out_size(W)
    extra_h = max(0, (Ho - 1) * stride + k - (H + 2 * padding))
    extra_w = max(0, (Wo - 1) * stride + k - (W + 2 * padding))
    neg_inf = jnp.array(-jnp.inf, dtype=x.dtype)
    return lax.reduce_window(
        x, neg_inf, lax.max,
        window_dimensions=(1, k, k, 1),
        window_strides=(1, stride, stride, 1),
        padding=((0, 0), (padding, padding + extra_h),
                 (padding, padding + extra_w), (0, 0)))


# -----------------------------------------------------------------------------
# Parameter construction (deterministic synthetic weights)
# -----------------------------------------------------------------------------
def init_conv(key, cin, cout, k):
    fan_in = cin * k * k
    w = jax.random.normal(key, (fan_in, cout), jnp.float32) * np.sqrt(2.0 / fan_in)
    b = jnp.zeros((cout,), jnp.float32)
    return dict(w=w, b=b, k=k)


def build_vgg_params(key, in_channels):
    layers = []
    keys = iter(jax.random.split(key, 32))
    c = in_channels
    for item in VGG300:
        if item == 'MaxPooling':
            layers.append(('pool', dict(k=2, s=2, p=0, ceil=False)))
        elif item == 'MaxPooling_Ceil':
            layers.append(('pool', dict(k=2, s=2, p=0, ceil=True)))
        else:
            d = init_conv(next(keys), c, item, 3)
            d.update(s=1, p=1, d=1)
            layers.append(('conv', d))
            layers.append(('relu', None))
            c = item
    layers.append(('pool', dict(k=3, s=1, p=1, ceil=False)))
    d = init_conv(next(keys), 512, 1024, 3); d.update(s=1, p=6, d=6)
    layers.append(('conv', d)); layers.append(('relu', None))
    d = init_conv(next(keys), 1024, 1024, 1); d.update(s=1, p=0, d=1)
    layers.append(('conv', d)); layers.append(('relu', None))
    return layers


def build_fe_params(key, out_channels):
    keys = iter(jax.random.split(key, 16))
    specs = [(out_channels, 256, 1, 1, 0), (256, 512, 3, 2, 1),
             (512, 128, 1, 1, 0), (128, 256, 3, 2, 1),
             (256, 128, 1, 1, 0), (128, 256, 3, 1, 0),
             (256, 128, 1, 1, 0), (128, 256, 3, 1, 0)]
    fe = []
    for cin, cout, k, s, p in specs:
        d = init_conv(next(keys), cin, cout, k)
        d.update(s=s, p=p)
        fe.append(d)
    return fe


def build_multibox_params(key, num_classes=21):
    head_in = [512, 1024, 512, 256, 256, 256]
    keys = iter(jax.random.split(key, 32))
    loc, conf = [], []
    for idx, cin in enumerate(head_in):
        loc.append(init_conv(next(keys), cin, MBOX300[idx] * 4, 3))
        conf.append(init_conv(next(keys), cin, MBOX300[idx] * num_classes, 3))
    return loc, conf


def prior_box(cfg):
    # Standard SSD PriorBox (class body not in the spec; standard implementation).
    mean = []
    for k, f in enumerate(cfg['feature_maps']):
        for i, j in itertools.product(range(f), repeat=2):
            f_k = cfg['min_dim'] / cfg['steps'][k]
            cx = (j + 0.5) / f_k
            cy = (i + 0.5) / f_k
            s_k = cfg['min_sizes'][k] / cfg['min_dim']
            mean += [cx, cy, s_k, s_k]
            s_k_prime = math.sqrt(s_k * (cfg['max_sizes'][k] / cfg['min_dim']))
            mean += [cx, cy, s_k_prime, s_k_prime]
            for ar in cfg['aspect_ratios'][k]:
                mean += [cx, cy, s_k * math.sqrt(ar), s_k / math.sqrt(ar)]
                mean += [cx, cy, s_k / math.sqrt(ar), s_k * math.sqrt(ar)]
    out = np.asarray(mean, dtype=np.float32).reshape(-1, 4)
    if cfg['clip']:
        out = np.clip(out, 0.0, 1.0)
    return jnp.asarray(out)


def build_ssd_params(key, in_channels=3, out_channels=1024, num_classes=21):
    k_vgg, k_fe, k_head = jax.random.split(key, 3)
    loc, conf = build_multibox_params(k_head, num_classes=21)
    return dict(
        vgg=build_vgg_params(k_vgg, in_channels),
        fe=build_fe_params(k_fe, out_channels),
        loc=loc, conf=conf,
        l2norm_gamma=jnp.full((512,), 20.0, jnp.float32),   # L2Norm(512, 20)
        priors=prior_box(VOC),
        num_classes=num_classes,
    )


# -----------------------------------------------------------------------------
# SSD forward (mirrors the PyTorch forward exactly)
# -----------------------------------------------------------------------------
def _apply_vgg_layer(layer, x):
    kind, p = layer
    if kind == 'conv':
        # every VGG conv is followed by ReLU -> fused into the Pallas kernel
        return conv2d(x, p, stride=p['s'], padding=p['p'], dilation=p['d'],
                      relu=True, out_dtype=jnp.bfloat16)
    if kind == 'pool':
        return maxpool(x, p['k'], p['s'], p['p'], p['ceil'])
    return x   # 'relu' entry already fused into the preceding conv kernel


def ssd_forward(params, x_nchw):
    # NCHW -> NHWC, bf16 activations throughout (f32 kept in MXU accumulators).
    x = jnp.transpose(x_nchw, (0, 2, 3, 1)).astype(jnp.bfloat16)
    vgg = params['vgg']
    architecture, loc_list, conf_list = [], [], []

    for idx in range(23):
        x = _apply_vgg_layer(vgg[idx], x)
    classifier1 = l2norm(x, params['l2norm_gamma'])
    architecture.append(classifier1)

    for idx in range(23, len(vgg)):
        x = _apply_vgg_layer(vgg[idx], x)
    architecture.append(x)

    for idx, p in enumerate(params['fe']):
        x = conv2d(x, p, stride=p['s'], padding=p['p'], relu=True,
                   out_dtype=jnp.bfloat16)
        if idx % 2 == 1:
            architecture.append(x)

    # loc + conf heads fused per feature map: one activation pass, split N.
    # Final head outputs stay in f32.
    for xm, lp, cp in zip(architecture, params['loc'], params['conf']):
        n_loc = lp['w'].shape[1]
        fused = dict(w=jnp.concatenate([lp['w'], cp['w']], axis=1),
                     b=jnp.concatenate([lp['b'], cp['b']], axis=0),
                     k=3)
        y = conv2d(xm, fused, stride=1, padding=1, relu=False,
                   out_dtype=jnp.float32)
        # NHWC layout == PyTorch permute(0,2,3,1).contiguous()
        loc_list.append(y[..., :n_loc])
        conf_list.append(y[..., n_loc:])

    B = x_nchw.shape[0]
    loc = jnp.concatenate([o.reshape(B, -1) for o in loc_list], axis=1)
    conf = jnp.concatenate([o.reshape(B, -1) for o in conf_list], axis=1)
    return (loc.reshape(B, -1, 4),
            conf.reshape(B, -1, params['num_classes']),
            params['priors'])


# -----------------------------------------------------------------------------
if __name__ == "__main__":
    key = jax.random.PRNGKey(0)
    k_param, k_x = jax.random.split(key)

    # SSD300: in_channels=3, out_channels=1024 (fc7 feeds the extra feature
    # layers), num_classes=21 (build_MultiBox hardcodes 21).
    params = build_ssd_params(k_param, in_channels=3, out_channels=1024,
                              num_classes=21)

    # Smallest input consistent with this architecture: the final valid 3x3
    # convs require the canonical 300x300 pyramid (38/19/10/5/3/1); batch=1.
    x = jax.random.normal(k_x, (1, 3, 300, 300), jnp.float32)

    loc, conf, priors = ssd_forward(params, x)
    jax.block_until_ready((loc, conf, priors))

    assert loc.shape == (1, 8732, 4), loc.shape
    assert conf.shape == (1, 8732, 21), conf.shape
    assert priors.shape == (8732, 4), priors.shape
    assert bool(jnp.all(jnp.isfinite(loc))) and bool(jnp.all(jnp.isfinite(conf)))
    print("KERNEL_OK")
</pallas_src>

<mosaic_0001>
module attributes {stable_mosaic.version = 11 : i64} {
  func.func @_mm_kernel(%arg0: i32, %arg1: i32, %arg2: i32, %arg3: memref<1024x27xbf16, #tpu.memory_space<vmem>>, %arg4: memref<27x64xbf16, #tpu.memory_space<vmem>>, %arg5: memref<1x64xf32, #tpu.memory_space<vmem>>, %arg6: memref<1024x64xbf16, #tpu.memory_space<vmem>>, %arg7: memref<1024x64xf32, #tpu.memory_space<vmem>>) attributes {dimension_semantics = [#tpu.dimension_semantics<parallel>, #tpu.dimension_semantics<parallel>, #tpu.dimension_semantics<arbitrary>], iteration_bounds = array<i64: 88, 1, 1>, scalar_prefetch = 0 : i64, scratch_operands = 1 : i64, tpu.core_type = #tpu.core_type<tc>, window_params = [{transform_indices = @transform_0, window_bounds = array<i64: 1024, 27>}, {transform_indices = @transform_1, window_bounds = array<i64: 27, 64>}, {transform_indices = @transform_2, window_bounds = array<i64: 1, 64>}, {transform_indices = @transform_3, window_bounds = array<i64: 1024, 64>}]} {
    %c0_i32 = arith.constant 0 : i32
    %0 = arith.cmpi eq, %arg2, %c0_i32 : i32
    %1 = arith.extui %0 : i1 to i32
    %c0_i32_0 = arith.constant 0 : i32
    %2 = arith.cmpi ne, %1, %c0_i32_0 : i32
    scf.if %2 {
      %cst_10 = arith.constant 0.000000e+00 : f32
      %12 = vector.broadcast %cst_10 : f32 to vector<1024x64xf32>
      %c0_11 = arith.constant 0 : index
      %c0_12 = arith.constant 0 : index
      %13 = vector.load %arg7[%c0_11, %c0_12] : memref<1024x64xf32, #tpu.memory_space<vmem>>, vector<1024x64xf32>
      tpu.vector_store %arg7[%c0_11, %c0_12], %12 {strides = array<i32>} : memref<1024x64xf32, #tpu.memory_space<vmem>>, vector<1024x64xf32>,
    } else {
    }
    %c0 = arith.constant 0 : index
    %c0_1 = arith.constant 0 : index
    %3 = vector.load %arg7[%c0, %c0_1] : memref<1024x64xf32, #tpu.memory_space<vmem>>, vector<1024x64xf32>
    %c0_2 = arith.constant 0 : index
    %c0_3 = arith.constant 0 : index
    %4 = vector.load %arg3[%c0_2, %c0_3] : memref<1024x27xbf16, #tpu.memory_space<vmem>>, vector<1024x27xbf16>
    %c0_4 = arith.constant 0 : index
    %c0_5 = arith.constant 0 : index
    %5 = vector.load %arg4[%c0_4, %c0_5] : memref<27x64xbf16, #tpu.memory_space<vmem>>, vector<27x64xbf16>
    %cst = arith.constant dense<0.000000e+00> : vector<1024x64xf32>
    %6 = tpu.matmul %4, %5, %cst {dimension_numbers = #tpu.dot_dimension_numbers<[1], [0], [0], [1], [0, 0, 1, 1], [], []>} : vector<1024x27xbf16>, vector<27x64xbf16>, vector<1024x64xf32> -> vector<1024x64xf32>
    %7 = arith.addf %3, %6 : vector<1024x64xf32>
    %c0_6 = arith.constant 0 : index
    %c0_7 = arith.constant 0 : index
    %8 = vector.load %arg7[%c0_6, %c0_7] : memref<1024x64xf32, #tpu.memory_space<vmem>>, vector<1024x64xf32>
    tpu.vector_store %arg7[%c0_6, %c0_7], %7 {strides = array<i32>} : memref<1024x64xf32, #tpu.memory_space<vmem>>, vector<1024x64xf32>,
    %c0_i32_8 = arith.constant 0 : i32
    %9 = arith.cmpi eq, %arg2, %c0_i32_8 : i32
    %10 = arith.extui %9 : i1 to i32
    %c0_i32_9 = arith.constant 0 : i32
    %11 = arith.cmpi ne, %10, %c0_i32_9 : i32
    scf.if %11 {
      %c0_10 = arith.constant 0 : index
      %c0_11 = arith.constant 0 : index
      %12 = vector.load %arg7[%c0_10, %c0_11] : memref<1024x64xf32, #tpu.memory_space<vmem>>, vector<1024x64xf32>
      %c0_12 = arith.constant 0 : index
      %c0_13 = arith.constant 0 : index
      %13 = vector.load %arg5[%c0_12, %c0_13] : memref<1x64xf32, #tpu.memory_space<vmem>>, vector<1x64xf32>
      %14 = vector.broadcast %13 : vector<1x64xf32> to vector<1024x64xf32>
      %15 = arith.addf %12, %14 : vector<1024x64xf32>
      %cst_14 = arith.constant 0.000000e+00 : f32
      %16 = vector.broadcast %cst_14 : f32 to vector<1024x64xf32>
      %17 = arith.maximumf %15, %16 : vector<1024x64xf32>
      %18 = arith.truncf %17 : vector<1024x64xf32> to vector<1024x64xbf16>
      %c0_15 = arith.constant 0 : index
      %c0_16 = arith.constant 0 : index
      %19 = vector.load %arg6[%c0_15, %c0_16] : memref<1024x64xbf16, #tpu.memory_space<vmem>>, vector<1024x64xbf16>
      tpu.vector_store %arg6[%c0_15, %c0_16], %18 {strides = array<i32>} : memref<1024x64xbf16, #tpu.memory_space<vmem>>, vector<1024x64xbf16>,
    } else {
    }
    return
  }
  func.func @transform_0(%arg0: i32, %arg1: i32, %arg2: i32) -> (i32, i32) {
    %c0_i32 = arith.constant 0 : i32
    return %arg0, %arg2 : i32, i32
  }
  func.func @transform_1(%arg0: i32, %arg1: i32, %arg2: i32) -> (i32, i32) {
    %c0_i32 = arith.constant 0 : i32
    return %arg2, %arg1 : i32, i32
  }
  func.func @transform_2(%arg0: i32, %arg1: i32, %arg2: i32) -> (i32, i32) {
    %c0_i32 = arith.constant 0 : i32
    %c0_i32_0 = arith.constant 0 : i32
    return %c0_i32, %arg1 : i32, i32
  }
  func.func @transform_3(%arg0: i32, %arg1: i32, %arg2: i32) -> (i32, i32) {
    %c0_i32 = arith.constant 0 : i32
    return %arg0, %arg1 : i32, i32
  }
}

</mosaic_0001>

<bundles_post_ra>
// kernel: matmul_bias.1
= control target key start
LH: loop header
LB: loop body
LE: loop exit
PB: predicated region body
PF: predicated region fallthrough
CT: control target
= control target key end

     0   :  { %s3482_s12 = smov 0   ;;  %s3484_s13 = smov 0   ;;  %s4929_s0 = inlined_call_operand.vmem [shape: bf16[90000,27], index: 0, kind: input, shape index: {}]   ;;  %s4930_s1 = inlined_call_operand.vmem [shape: bf16[27,64], index: 1, kind: input, shape index: {}]   ;;  %s4931_s2 = inlined_call_operand.vmem [shape: f32[1,64], index: 2, kind: input, shape index: {}]   ;;  %s4932_s3 = inlined_call_operand.vmem [shape: bf16[90000,64], index: 3, kind: output, shape index: {}]  }
   0x1   :  { %s3486_s14 = smov 0   ;;  %s3488_s15 = smov 0  }
   0x2   :  { %s3490_s16 = smov 0  }
   0x3 LB: > { %s2817_s17 = sadd.s32 4294967295, %s3426_s16   ;;  %s32_s18 = sadd.s32 1, %s3422_s15  ;;  %s3426_s16 = sphi %s3490_s16, %s13_s16   ;;  %s3422_s15 = sphi %s3488_s15, %s4942_s15   ;;  %s3418_s14 = sphi %s3486_s14, %s4941_s14   ;;  %s3414_s13 = sphi %s3484_s13, %s4940_s13   ;;  %s3410_s12 = sphi %s3482_s12, %s4939_s12  }
   0x4   : > { %p34_p0 = scmp.ge.s32.totalorder %s32_s18, 88  ;;  %s123_s19 = sadd.s32 1, %s3414_s13 }
   0x5   : > { %p133_p1 = scmp.ne.s32.totalorder %s3414_s13, %s3410_s12  ;;  %p134_p2 = scmp.eq.s32.totalorder %s2817_s17, 87 }
   0x6   : > { %s4944_s18 = smov (%p34_p0, %s32_s18), 0  ;;  %p2823_p4 = scmp.ge.s32.totalorder %s3426_s16, 1 }
   0x7   : > { %p3514_p3 = por %p134_p2, %p133_p1  ;;  %s118_s21 = ssub.s32 %s3422_s15, %s4944_s18 }
   0x8   : > { %p196_p5 = scmp.lt.s32.totalorder %s3426_s16, 89  ;;  %p121_p6 = scmp.eq.s32.totalorder %s118_s21, 0 }
   0xa   : > { %p197_p7 = pnand %p2823_p4, %p196_p5 }
   0xb   : > { %s3523_s22 = scalar_select %p121_p6, %s3414_s13, %s123_s19  }
   0xc   : > { %200 = sbr.rel (%p197_p7) target bundleno = 507 (0x1fb), region = 32  ;;  %s3532_s27 = sshll.u32 (!%p197_p7), %s3418_s14, 7 }
   0xd   : > { %p242_p8 = scmp.lt.s32.totalorder (!%p197_p7), %s3532_s27, 11249  ;;  %s234_s10 = sand.u32 (!%p197_p7), 1, %s3410_s12  }
   0xe   : > { %s2824_s11 = sshll.u32 (!%p197_p7), %s234_s10, 9 }
   0xf   : > { %s3734_s12 = scalar_lea.vmem (!%p197_p7), [#allocation3], %s2824_s11  }
  0x11   : > { %v3089_v0 = vld [vmem:[%s4930_s1 + $0x8] sm:$0xf]  ;;  %v3237_v1 = vld [vmem:[%s4930_s1 + $0x8] sm:$0x30]  ;;  %vm1189_vm0 = vcmask 1044480   ;;  %vm1190_vm1 = vcmask 1045504  }
  0x12   : > { %v3090_v2 = vor.u32 %v3237_v1, %v3089_v0  ;;  %v3460_v3 = vmov 65535   ;;  %s243_s28 = scalar_select %p242_p8, %s3532_s27, 11249  ;;  %v3236_v7 = vld [vmem:[%s4930_s1] sm:$0xff]  ;;  %vm996_vm2 = vcmask 220160   ;;  %vm276_vm3 = vcmask 523264  }
  0x13   : > { %v1191_v4 = vsel %vm1189_vm0, 4294967295, %v3460_v3  ;;  %v3461_v32 = vmov 0.0   ;;  %v3710_v44 = vld [vmem:[%s4931_s2] ss:$0 sm:$0xff]  ;;  %vm2301_vm4 = vcmask 519168   ;;  %s2438_s24 = ssub.s32 (%p3514_p3), 11250, %s3532_s27 }
  0x14   : > { %v1192_v5 = vsel %vm1190_vm1, %v1191_v4, 0  ;;  %s2826_s4 = sshll.u32 %s243_s28, 2  ;;  %277 = vst.msk [vmem:[#allocation2] sm:$0xff] %vm276_vm3, %v3461_v32  ;;  %s3238_s25 = sshll.u32 (%p3514_p3), %s3418_s14, 9 }
  0x15   : > { %v1194_v6 = vand.u32 %v3090_v2, %v1192_v5  ;;  %s3542_s7 = scalar_lea.vmem %s4929_s0, %s2826_s4  ;;  %278 = vst.msk [vmem:[#allocation2 + $0x8] sm:$0xff] %vm276_vm3, %v3461_v32  ;;  %p2439_p9 = scmp.lt.s32.totalorder (%p3514_p3), %s2438_s24, 128 }
  0x16   : > { %v3172_v8 = vld [vmem:[%s3542_s7] sm:$0xff]  ;;  %v3173_v12 = vld [vmem:[%s3542_s7 + $0x8] sm:$0xff]  ;;  %v3174_v16 = vld [vmem:[%s3542_s7 + $0x10] sm:$0xff]  ;;  %279 = vst.msk [vmem:[#allocation2 + $0x10] sm:$0xff] %vm276_vm3, %v3461_v32  ;;  %s4789_s29 = scalar_lea.vmem (%p3514_p3), %s4932_s3, %s3238_s25  }
  0x17   : > { %1202 = vmatpush.bf16.msra.mxu0 %v1194_v6  ;;  %3241 = vmatpush.bf16.msra.mxu1 %v1194_v6  ;;  %v3188_v9 = vld [vmem:[%s3542_s7 + $0x80] sm:$0xff]  ;;  %v3189_v13 = vld [vmem:[%s3542_s7 + $0x88] sm:$0xff]  ;;  %v3190_v17 = vld [vmem:[%s3542_s7 + $0x90] sm:$0xff]  ;;  %280 = vst.msk [vmem:[#allocation2 + $0x18] sm:$0xff] %vm276_vm3, %v3461_v32 }
  0x18   : > { %3242 = vmatpush.bf16.msra.mxu2 %v1194_v6  ;;  %3243 = vmatpush.bf16.msra.mxu3 %v1194_v6  ;;  %v3204_v10 = vld [vmem:[%s3542_s7 + $0x100] sm:$0xff]  ;;  %v3205_v14 = vld [vmem:[%s3542_s7 + $0x108] sm:$0xff]  ;;  %v3206_v18 = vld [vmem:[%s3542_s7 + $0x110] sm:$0xff]  ;;  %281 = vst.msk [vmem:[#allocation2 + $0x20] sm:$0xff] %vm276_vm3, %v3461_v32 }
  0x19   : > { %v3220_v11 = vld [vmem:[%s3542_s7 + $0x180] sm:$0xff]  ;;  %v3221_v15 = vld [vmem:[%s3542_s7 + $0x188] sm:$0xff]  ;;  %v3222_v19 = vld [vmem:[%s3542_s7 + $0x190] sm:$0xff]  ;;  %282 = vst.msk [vmem:[#allocation2 + $0x28] sm:$0xff] %vm276_vm3, %v3461_v32 }
  0x1a   : > { %v3175_v20 = vld [vmem:[%s3542_s7 + $0x18] sm:$0xff]  ;;  %v3176_v24 = vld [vmem:[%s3542_s7 + $0x20] sm:$0xff]  ;;  %v3177_v28 = vld [vmem:[%s3542_s7 + $0x28] sm:$0xff]  ;;  %283 = vst.msk [vmem:[#allocation2 + $0x30] sm:$0xff] %vm276_vm3, %v3461_v32 }
  0x1b   : > { %1203 = vmatpush.bf16.msra.mxu0 %v3236_v7  ;;  %3244 = vmatpush.bf16.msra.mxu1 %v3236_v7  ;;  %v3191_v21 = vld [vmem:[%s3542_s7 + $0x98] sm:$0xff]  ;;  %v3192_v25 = vld [vmem:[%s3542_s7 + $0xa0] sm:$0xff]  ;;  %v3193_v29 = vld [vmem:[%s3542_s7 + $0xa8] sm:$0xff]  ;;  %284 = vst.msk [vmem:[#allocation2 + $0x38] sm:$0xff] %vm276_vm3, %v3461_v32 }
  0x1c   : > { %3245 = vmatpush.bf16.msra.mxu2 %v3236_v7  ;;  %3246 = vmatpush.bf16.msra.mxu3 %v3236_v7  ;;  %v3207_v22 = vld [vmem:[%s3542_s7 + $0x118] sm:$0xff]  ;;  %v3208_v26 = vld [vmem:[%s3542_s7 + $0x120] sm:$0xff]  ;;  %v3209_v30 = vld [vmem:[%s3542_s7 + $0x128] sm:$0xff]  ;;  %285 = vst.msk [vmem:[#allocation2 + $0x40] sm:$0xff] %vm276_vm3, %v3461_v32 }
  0x1d   : > { %v3223_v23 = vld [vmem:[%s3542_s7 + $0x198] sm:$0xff]  ;;  %v3224_v27 = vld [vmem:[%s3542_s7 + $0x1a0] sm:$0xff]  ;;  %v3225_v31 = vld [vmem:[%s3542_s7 + $0x1a8] sm:$0xff]  ;;  %286 = vst.msk [vmem:[#allocation2 + $0x48] sm:$0xff] %vm276_vm3, %v3461_v32 }
  0x1e   : > { %3091 = vmatmul.msk.bf16.vlgmr.msra.gmra.mxu0 %vm996_vm2, %v3172_v8  ;;  %3107 = vmatmul.msk.bf16.vlgmr.msra.gmra.mxu1 %vm996_vm2, %v3188_v9  ;;  %v3178_v33 = vld [vmem:[%s3542_s7 + $0x30] sm:$0xff]  ;;  %287 = vst.msk [vmem:[#allocation2 + $0x50] sm:$0xff] %vm276_vm3, %v3461_v32  ;;  %v3179_v37 = vld [vmem:[%s3542_s7 + $0x38] sm:$0xff]  ;;  %v405_v41 = vld [vmem:[#allocation2] sm:$0xff] }
  0x1f   : > { %3123 = vmatmul.msk.bf16.vlgmr.msra.gmra.mxu2 %vm996_vm2, %v3204_v10  ;;  %3139 = vmatmul.msk.bf16.vlgmr.msra.gmra.mxu3 %vm996_vm2, %v3220_v11  ;;  %v3194_v34 = vld [vmem:[%s3542_s7 + $0xb0] sm:$0xff]  ;;  %288 = vst.msk [vmem:[#allocation2 + $0x58] sm:$0xff] %vm276_vm3, %v3461_v32  ;;  %v3195_v38 = vld [vmem:[%s3542_s7 + $0xb8] sm:$0xff]  ;;  %v3180_v50 = vld [vmem:[%s3542_s7 + $0x40] sm:$0xff] }
  0x20   : > { %v3210_v35 = vld [vmem:[%s3542_s7 + $0x130] sm:$0xff]  ;;  %289 = vst.msk [vmem:[#allocation2 + $0x60] sm:$0xff] %vm276_vm3, %v3461_v32  ;;  %v3211_v39 = vld [vmem:[%s3542_s7 + $0x138] sm:$0xff]  ;;  %v3196_v51 = vld [vmem:[%s3542_s7 + $0xc0] sm:$0xff] }
  0x21   : > { %v3226_v36 = vld [vmem:[%s3542_s7 + $0x1b0] sm:$0xff]  ;;  %290 = vst.msk [vmem:[#allocation2 + $0x68] sm:$0xff] %vm276_vm3, %v3461_v32  ;;  %v3227_v40 = vld [vmem:[%s3542_s7 + $0x1b8] sm:$0xff]  ;;  %v3212_v52 = vld [vmem:[%s3542_s7 + $0x140] sm:$0xff] }
  0x22   : > { %291 = vst.msk [vmem:[#allocation2 + $0x70] sm:$0xff] %vm276_vm3, %v3461_v32  ;;  %v3228_v53 = vld [vmem:[%s3542_s7 + $0x1c0] sm:$0xff]  ;;  %v3181_v62 = vld [vmem:[%s3542_s7 + $0x48] sm:$0xff] }
  0x23   : > { %292 = vst.msk [vmem:[#allocation2 + $0x78] sm:$0xff] %vm276_vm3, %v3461_v32  ;;  %v3197_v63 = vld [vmem:[%s3542_s7 + $0xc8] sm:$0xff] }
  0x24   : > { %293 = vst.msk [vmem:[#allocation2 + $0x80] sm:$0xff] %vm276_vm3, %v3461_v32  ;;  %v3213_v0 = vld [vmem:[%s3542_s7 + $0x148] sm:$0xff] }
  0x25   : > { %294 = vst.msk [vmem:[#allocation2 + $0x88] sm:$0xff] %vm276_vm3, %v3461_v32  ;;  %v3229_v1 = vld [vmem:[%s3542_s7 + $0x1c8] sm:$0xff] }
  0x26   : > { %295 = vst.msk [vmem:[#allocation2 + $0x90] sm:$0xff] %vm276_vm3, %v3461_v32  ;;  %v406_v11 = vld [vmem:[#allocation2 + $0x8] sm:$0xff] }
  0x27   : > { %296 = vst.msk [vmem:[#allocation2 + $0x98] sm:$0xff] %vm276_vm3, %v3461_v32 }
  0x28   : > { %297 = vst.msk [vmem:[#allocation2 + $0xa0] sm:$0xff] %vm276_vm3, %v3461_v32 }
  0x29   : > { %298 = vst.msk [vmem:[#allocation2 + $0xa8] sm:$0xff] %vm276_vm3, %v3461_v32 }
  0x2a   : > { %299 = vst.msk [vmem:[#allocation2 + $0xb0] sm:$0xff] %vm276_vm3, %v3461_v32 }
  0x2b   : > { %300 = vst.msk [vmem:[#allocation2 + $0xb8] sm:$0xff] %vm276_vm3, %v3461_v32 }
  0x2c   : > { %301 = vst.msk [vmem:[#allocation2 + $0xc0] sm:$0xff] %vm276_vm3, %v3461_v32 }
  0x2d   : > { %302 = vst.msk [vmem:[#allocation2 + $0xc8] sm:$0xff] %vm276_vm3, %v3461_v32 }
  0x2e   : > { %3092 = vmatmul.msk.bf16.gmra.mxu0 %vm996_vm2, %v3173_v12  ;;  %3108 = vmatmul.msk.bf16.gmra.mxu1 %vm996_vm2, %v3189_v13  ;;  %303 = vst.msk [vmem:[#allocation2 + $0xd0] sm:$0xff] %vm276_vm3, %v3461_v32 }
  0x2f   : > { %3124 = vmatmul.msk.bf16.gmra.mxu2 %vm996_vm2, %v3205_v14  ;;  %3140 = vmatmul.msk.bf16.gmra.mxu3 %vm996_vm2, %v3221_v15  ;;  %304 = vst.msk [vmem:[#allocation2 + $0xd8] sm:$0xff] %vm276_vm3, %v3461_v32  ;;  %v3182_v15 = vld [vmem:[%s3542_s7 + $0x50] sm:$0xff] }
  0x30   : > { %305 = vst.msk [vmem:[#allocation2 + $0xe0] sm:$0xff] %vm276_vm3, %v3461_v32 }
  0x31   : > { %306 = vst.msk [vmem:[#allocation2 + $0xe8] sm:$0xff] %vm276_vm3, %v3461_v32 }
  0x32   : > { %307 = vst.msk [vmem:[#allocation2 + $0xf0] sm:$0xff] %vm276_vm3, %v3461_v32 }
  0x33   : > { %308 = vst.msk [vmem:[#allocation2 + $0xf8] sm:$0xff] %vm276_vm3, %v3461_v32 }
  0x34   : > { %309 = vst.msk [vmem:[#allocation2 + $0x100] sm:$0xff] %vm276_vm3, %v3461_v32 }
  0x35   : > { %310 = vst.msk [vmem:[#allocation2 + $0x108] sm:$0xff] %vm276_vm3, %v3461_v32 }
  0x36   : > { %311 = vst.msk [vmem:[#allocation2 + $0x110] sm:$0xff] %vm276_vm3, %v3461_v32 }
  0x37   : > { %312 = vst.msk [vmem:[#allocation2 + $0x118] sm:$0xff] %vm276_vm3, %v3461_v32 }
  0x38   : > { %313 = vst.msk [vmem:[#allocation2 + $0x120] sm:$0xff] %vm276_vm3, %v3461_v32 }
  0x39   : > { %314 = vst.msk [vmem:[#allocation2 + $0x128] sm:$0xff] %vm276_vm3, %v3461_v32 }
  0x3a   : > { %315 = vst.msk [vmem:[#allocation2 + $0x130] sm:$0xff] %vm276_vm3, %v3461_v32 }
  0x3b   : > { %316 = vst.msk [vmem:[#allocation2 + $0x138] sm:$0xff] %vm276_vm3, %v3461_v32  ;;  %v437_v8 = vld [vmem:[#allocation2 + $0x100] sm:$0xff] }
  0x3c   : > { %317 = vst.msk [vmem:[#allocation2 + $0x140] sm:$0xff] %vm276_vm3, %v3461_v32 }
  0x3d   : > { %318 = vst.msk [vmem:[#allocation2 + $0x148] sm:$0xff] %vm276_vm3, %v3461_v32 }
  0x3e   : > { %3093 = vmatmul.msk.bf16.gmra.mxu0 %vm996_vm2, %v3174_v16  ;;  %3109 = vmatmul.msk.bf16.gmra.mxu1 %vm996_vm2, %v3190_v17  ;;  %319 = vst.msk [vmem:[#allocation2 + $0x150] sm:$0xff] %vm276_vm3, %v3461_v32  ;;  %v3198_v16 = vld [vmem:[%s3542_s7 + $0xd0] sm:$0xff] }
  0x3f   : > { %3125 = vmatmul.msk.bf16.gmra.mxu2 %vm996_vm2, %v3206_v18  ;;  %3141 = vmatmul.msk.bf16.gmra.mxu3 %vm996_vm2, %v3222_v19  ;;  %320 = vst.msk [vmem:[#allocation2 + $0x158] sm:$0xff] %vm276_vm3, %v3461_v32  ;;  %v3214_v17 = vld [vmem:[%s3542_s7 + $0x150] sm:$0xff]  ;;  %v438_v19 = vld [vmem:[#allocation2 + $0x108] sm:$0xff] }
  0x40   : > { %321 = vst.msk [vmem:[#allocation2 + $0x160] sm:$0xff] %vm276_vm3, %v3461_v32 }
  0x41   : > { %322 = vst.msk [vmem:[#allocation2 + $0x168] sm:$0xff] %vm276_vm3, %v3461_v32 }
  0x42   : > { %323 = vst.msk [vmem:[#allocation2 + $0x170] sm:$0xff] %vm276_vm3, %v3461_v32 }
  0x43   : > { %324 = vst.msk [vmem:[#allocation2 + $0x178] sm:$0xff] %vm276_vm3, %v3461_v32 }
  0x44   : > { %325 = vst.msk [vmem:[#allocation2 + $0x180] sm:$0xff] %vm276_vm3, %v3461_v32 }
  0x45   : > { %326 = vst.msk [vmem:[#allocation2 + $0x188] sm:$0xff] %vm276_vm3, %v3461_v32 }
  0x46   : > { %327 = vst.msk [vmem:[#allocation2 + $0x190] sm:$0xff] %vm276_vm3, %v3461_v32 }
  0x47   : > { %328 = vst.msk [vmem:[#allocation2 + $0x198] sm:$0xff] %vm276_vm3, %v3461_v32 }
  0x48   : > { %329 = vst.msk [vmem:[#allocation2 + $0x1a0] sm:$0xff] %vm276_vm3, %v3461_v32 }
  0x49   : > { %330 = vst.msk [vmem:[#allocation2 + $0x1a8] sm:$0xff] %vm276_vm3, %v3461_v32 }
  0x4a   : > { %331 = vst.msk [vmem:[#allocation2 + $0x1b0] sm:$0xff] %vm276_vm3, %v3461_v32 }
  0x4b   : > { %332 = vst.msk [vmem:[#allocation2 + $0x1b8] sm:$0xff] %vm276_vm3, %v3461_v32 }
  0x4c   : > { %333 = vst.msk [vmem:[#allocation2 + $0x1c0] sm:$0xff] %vm276_vm3, %v3461_v32 }
  0x4d   : > { %334 = vst.msk [vmem:[#allocation2 + $0x1c8] sm:$0xff] %vm276_vm3, %v3461_v32 }
  0x4e   : > { %3094 = vmatmul.msk.bf16.gmra.mxu0 %vm996_vm2, %v3175_v20  ;;  %3110 = vmatmul.msk.bf16.gmra.mxu1 %vm996_vm2, %v3191_v21  ;;  %335 = vst.msk [vmem:[#allocation2 + $0x1d0] sm:$0xff] %vm276_vm3, %v3461_v32  ;;  %v3230_v20 = vld [vmem:[%s3542_s7 + $0x1d0] sm:$0xff] }
  0x4f   : > { %3126 = vmatmul.msk.bf16.gmra.mxu2 %vm996_vm2, %v3207_v22  ;;  %3142 = vmatmul.msk.bf16.gmra.mxu3 %vm996_vm2, %v3223_v23  ;;  %336 = vst.msk [vmem:[#allocation2 + $0x1d8] sm:$0xff] %vm276_vm3, %v3461_v32 }
  0x50   : > { %337 = vst.msk [vmem:[#allocation2 + $0x1e0] sm:$0xff] %vm276_vm3, %v3461_v32 }
  0x51   : > { %338 = vst.msk [vmem:[#allocation2 + $0x1e8] sm:$0xff] %vm276_vm3, %v3461_v32 }
  0x52   : > { %339 = vst.msk [vmem:[#allocation2 + $0x1f0] sm:$0xff] %vm276_vm3, %v3461_v32 }
  0x53   : > { %340 = vst.msk [vmem:[#allocation2 + $0x1f8] sm:$0xff] %vm276_vm3, %v3461_v32 }
  0x54   : > { %341 = vst.msk [vmem:[#allocation2 + $0x200] sm:$0xff] %vm276_vm3, %v3461_v32 }
  0x55   : > { %342 = vst.msk [vmem:[#allocation2 + $0x208] sm:$0xff] %vm276_vm3, %v3461_v32 }
  0x56   : > { %343 = vst.msk [vmem:[#allocation2 + $0x210] sm:$0xff] %vm276_vm3, %v3461_v32 }
  0x57   : > { %344 = vst.msk [vmem:[#allocation2 + $0x218] sm:$0xff] %vm276_vm3, %v3461_v32 }
  0x58   : > { %345 = vst.msk [vmem:[#allocation2 + $0x220] sm:$0xff] %vm276_vm3, %v3461_v32 }
  0x59   : > { %346 = vst.msk [vmem:[#allocation2 + $0x228] sm:$0xff] %vm276_vm3, %v3461_v32 }
  0x5a   : > { %347 = vst.msk [vmem:[#allocation2 + $0x230] sm:$0xff] %vm276_vm3, %v3461_v32 }
  0x5b   : > { %348 = vst.msk [vmem:[#allocation2 + $0x238] sm:$0xff] %vm276_vm3, %v3461_v32  ;;  %v469_v9 = vld [vmem:[#allocation2 + $0x200] sm:$0xff] }
  0x5c   : > { %349 = vst.msk [vmem:[#allocation2 + $0x240] sm:$0xff] %vm276_vm3, %v3461_v32  ;;  %v470_v22 = vld [vmem:[#allocation2 + $0x208] sm:$0xff] }
  0x5d   : > { %350 = vst.msk [vmem:[#allocation2 + $0x248] sm:$0xff] %vm276_vm3, %v3461_v32 }
  0x5e   : > { %3095 = vmatmul.msk.bf16.gmra.mxu0 %vm996_vm2, %v3176_v24  ;;  %3111 = vmatmul.msk.bf16.gmra.mxu1 %vm996_vm2, %v3192_v25  ;;  %351 = vst.msk [vmem:[#allocation2 + $0x250] sm:$0xff] %vm276_vm3, %v3461_v32 }
  0x5f   : > { %3127 = vmatmul.msk.bf16.gmra.mxu2 %vm996_vm2, %v3208_v26  ;;  %3143 = vmatmul.msk.bf16.gmra.mxu3 %vm996_vm2, %v3224_v27  ;;  %352 = vst.msk [vmem:[#allocation2 + $0x258] sm:$0xff] %vm276_vm3, %v3461_v32  ;;  %v407_v26 = vld [vmem:[#allocation2 + $0x10] sm:$0xff] }
  0x60   : > { %353 = vst.msk [vmem:[#allocation2 + $0x260] sm:$0xff] %vm276_vm3, %v3461_v32 }
  0x61   : > { %354 = vst.msk [vmem:[#allocation2 + $0x268] sm:$0xff] %vm276_vm3, %v3461_v32 }
  0x62   : > { %355 = vst.msk [vmem:[#allocation2 + $0x270] sm:$0xff] %vm276_vm3, %v3461_v32 }
  0x63   : > { %356 = vst.msk [vmem:[#allocation2 + $0x278] sm:$0xff] %vm276_vm3, %v3461_v32 }
  0x64   : > { %357 = vst.msk [vmem:[#allocation2 + $0x280] sm:$0xff] %vm276_vm3, %v3461_v32 }
  0x65   : > { %358 = vst.msk [vmem:[#allocation2 + $0x288] sm:$0xff] %vm276_vm3, %v3461_v32 }
  0x66   : > { %359 = vst.msk [vmem:[#allocation2 + $0x290] sm:$0xff] %vm276_vm3, %v3461_v32 }
  0x67   : > { %360 = vst.msk [vmem:[#allocation2 + $0x298] sm:$0xff] %vm276_vm3, %v3461_v32 }
  0x68   : > { %361 = vst.msk [vmem:[#allocation2 + $0x2a0] sm:$0xff] %vm276_vm3, %v3461_v32 }
  0x69   : > { %362 = vst.msk [vmem:[#allocation2 + $0x2a8] sm:$0xff] %vm276_vm3, %v3461_v32 }
  0x6a   : > { %363 = vst.msk [vmem:[#allocation2 + $0x2b0] sm:$0xff] %vm276_vm3, %v3461_v32 }
  0x6b   : > { %364 = vst.msk [vmem:[#allocation2 + $0x2b8] sm:$0xff] %vm276_vm3, %v3461_v32 }
  0x6c   : > { %365 = vst.msk [vmem:[#allocation2 + $0x2c0] sm:$0xff] %vm276_vm3, %v3461_v32 }
  0x6d   : > { %366 = vst.msk [vmem:[#allocation2 + $0x2c8] sm:$0xff] %vm276_vm3, %v3461_v32 }
  0x6e   : > { %3096 = vmatmul.msk.bf16.gmra.mxu0 %vm996_vm2, %v3177_v28  ;;  %3112 = vmatmul.msk.bf16.gmra.mxu1 %vm996_vm2, %v3193_v29  ;;  %367 = vst.msk [vmem:[#allocation2 + $0x2d0] sm:$0xff] %vm276_vm3, %v3461_v32  ;;  %v439_v28 = vld [vmem:[#allocation2 + $0x110] sm:$0xff] }
  0x6f   : > { %3128 = vmatmul.msk.bf16.gmra.mxu2 %vm996_vm2, %v3209_v30  ;;  %3144 = vmatmul.msk.bf16.gmra.mxu3 %vm996_vm2, %v3225_v31  ;;  %368 = vst.msk [vmem:[#allocation2 + $0x2d8] sm:$0xff] %vm276_vm3, %v3461_v32 }
  0x70   : > { %369 = vst.msk [vmem:[#allocation2 + $0x2e0] sm:$0xff] %vm276_vm3, %v3461_v32 }
  0x71   : > { %370 = vst.msk [vmem:[#allocation2 + $0x2e8] sm:$0xff] %vm276_vm3, %v3461_v32 }
  0x72   : > { %371 = vst.msk [vmem:[#allocation2 + $0x2f0] sm:$0xff] %vm276_vm3, %v3461_v32 }
  0x73   : > { %372 = vst.msk [vmem:[#allocation2 + $0x2f8] sm:$0xff] %vm276_vm3, %v3461_v32 }
  0x74   : > { %373 = vst.msk [vmem:[#allocation2 + $0x300] sm:$0xff] %vm276_vm3, %v3461_v32 }
  0x75   : > { %374 = vst.msk [vmem:[#allocation2 + $0x308] sm:$0xff] %vm276_vm3, %v3461_v32 }
  0x76   : > { %375 = vst.msk [vmem:[#allocation2 + $0x310] sm:$0xff] %vm276_vm3, %v3461_v32 }
  0x77   : > { %376 = vst.msk [vmem:[#allocation2 + $0x318] sm:$0xff] %vm276_vm3, %v3461_v32 }
  0x78   : > { %377 = vst.msk [vmem:[#allocation2 + $0x320] sm:$0xff] %vm276_vm3, %v3461_v32 }
  0x79   : > { %378 = vst.msk [vmem:[#allocation2 + $0x328] sm:$0xff] %vm276_vm3, %v3461_v32 }
  0x7a   : > { %379 = vst.msk [vmem:[#allocation2 + $0x330] sm:$0xff] %vm276_vm3, %v3461_v32 }
  0x7b   : > { %380 = vst.msk [vmem:[#allocation2 + $0x338] sm:$0xff] %vm276_vm3, %v3461_v32  ;;  %v501_v10 = vld [vmem:[#allocation2 + $0x300] sm:$0xff] }
  0x7c   : > { %381 = vst.msk [vmem:[#allocation2 + $0x340] sm:$0xff] %vm276_vm3, %v3461_v32  ;;  %v502_v24 = vld [vmem:[#allocation2 + $0x308] sm:$0xff] }
  0x7d   : > { %382 = vst.msk [vmem:[#allocation2 + $0x348] sm:$0xff] %vm276_vm3, %v3461_v32 }
  0x7e   : > { %3097 = vmatmul.msk.bf16.gmra.mxu0 %vm996_vm2, %v3178_v33  ;;  %3113 = vmatmul.msk.bf16.gmra.mxu1 %vm996_vm2, %v3194_v34  ;;  %383 = vst.msk [vmem:[#allocation2 + $0x350] sm:$0xff] %vm276_vm3, %v3461_v32  ;;  %v503_v34 = vld [vmem:[#allocation2 + $0x310] sm:$0xff] }
  0x7f   : > { %3129 = vmatmul.msk.bf16.gmra.mxu2 %vm996_vm2, %v3210_v35  ;;  %3145 = vmatmul.msk.bf16.gmra.mxu3 %vm996_vm2, %v3226_v36  ;;  %384 = vst.msk [vmem:[#allocation2 + $0x358] sm:$0xff] %vm276_vm3, %v3461_v32 }
  0x80   : > { %385 = vst.msk [vmem:[#allocation2 + $0x360] sm:$0xff] %vm276_vm3, %v3461_v32 }
  0x81   : > { %386 = vst.msk [vmem:[#allocation2 + $0x368] sm:$0xff] %vm276_vm3, %v3461_v32 }
  0x82   : > { %387 = vst.msk [vmem:[#allocation2 + $0x370] sm:$0xff] %vm276_vm3, %v3461_v32 }
  0x83   : > { %388 = vst.msk [vmem:[#allocation2 + $0x378] sm:$0xff] %vm276_vm3, %v3461_v32 }
  0x84   : > { %389 = vst.msk [vmem:[#allocation2 + $0x380] sm:$0xff] %vm276_vm3, %v3461_v32 }
  0x85   : > { %390 = vst.msk [vmem:[#allocation2 + $0x388] sm:$0xff] %vm276_vm3, %v3461_v32 }
  0x86   : > { %391 = vst.msk [vmem:[#allocation2 + $0x390] sm:$0xff] %vm276_vm3, %v3461_v32 }
  0x87   : > { %392 = vst.msk [vmem:[#allocation2 + $0x398] sm:$0xff] %vm276_vm3, %v3461_v32 }
  0x88   : > { %393 = vst.msk [vmem:[#allocation2 + $0x3a0] sm:$0xff] %vm276_vm3, %v3461_v32 }
  0x89   : > { %394 = vst.msk [vmem:[#allocation2 + $0x3a8] sm:$0xff] %vm276_vm3, %v3461_v32 }
  0x8a   : > { %395 = vst.msk [vmem:[#allocation2 + $0x3b0] sm:$0xff] %vm276_vm3, %v3461_v32 }
  0x8b   : > { %396 = vst.msk [vmem:[#allocation2 + $0x3b8] sm:$0xff] %vm276_vm3, %v3461_v32 }
  0x8c   : > { %397 = vst.msk [vmem:[#allocation2 + $0x3c0] sm:$0xff] %vm276_vm3, %v3461_v32 }
  0x8d   : > { %398 = vst.msk [vmem:[#allocation2 + $0x3c8] sm:$0xff] %vm276_vm3, %v3461_v32 }
  0x8e   : > { %3098 = vmatmul.msk.bf16.gmra.mxu0 %vm996_vm2, %v3179_v37  ;;  %3114 = vmatmul.msk.bf16.gmra.mxu1 %vm996_vm2, %v3195_v38  ;;  %399 = vst.msk [vmem:[#allocation2 + $0x3d0] sm:$0xff] %vm276_vm3, %v3461_v32  ;;  %v408_v38 = vld [vmem:[#allocation2 + $0x18] sm:$0xff] }
  0x8f   : > { %3130 = vmatmul.msk.bf16.gmra.mxu2 %vm996_vm2, %v3211_v39  ;;  %3146 = vmatmul.msk.bf16.gmra.mxu3 %vm996_vm2, %v3227_v40  ;;  %400 = vst.msk [vmem:[#allocation2 + $0x3d8] sm:$0xff] %vm276_vm3, %v3461_v32  ;;  %v440_v40 = vld [vmem:[#allocation2 + $0x118] sm:$0xff] }
  0x90   : > { %401 = vst.msk [vmem:[#allocation2 + $0x3e0] sm:$0xff] %vm276_vm3, %v3461_v32 }
  0x91   : > { %402 = vst.msk [vmem:[#allocation2 + $0x3e8] sm:$0xff] %vm276_vm3, %v3461_v32 }
  0x92   : > { %403 = vst.msk [vmem:[#allocation2 + $0x3f0] sm:$0xff] %vm276_vm3, %v3461_v32 }
  0x93   : > { %404 = vst.msk [vmem:[#allocation2 + $0x3f8] sm:$0xff] %vm276_vm3, %v3461_v32  ;;  %v471_v32 = vld [vmem:[#allocation2 + $0x210] sm:$0xff] }
  0x9b   : > { %v1205_v42 = vpop.f32.mrf.mxu0  ;;  %v3796_v49 = vpop.f32.mrf.mxu1 }
  0x9c   : > { %v1525_v43 = vadd.f32 %v1205_v42, %v405_v41  ;;  %v1557_v14 = vadd.f32 %v3796_v49, %v437_v8  ;;  %v472_v42 = vld [vmem:[#allocation2 + $0x218] sm:$0xff] }
  0x9e   : > { %1654 = vst.msk [vmem:[#allocation2] sm:$0xff] %vm276_vm3, %v1525_v43  ;;  %3099 = vmatmul.msk.bf16.gmra.mxu0 %vm996_vm2, %v3180_v50  ;;  %3115 = vmatmul.msk.bf16.gmra.mxu1 %vm996_vm2, %v3196_v51 }
  0x9f   : > { %3131 = vmatmul.msk.bf16.gmra.mxu2 %vm996_vm2, %v3212_v52  ;;  %3147 = vmatmul.msk.bf16.gmra.mxu3 %vm996_vm2, %v3228_v53  ;;  %1686 = vst.msk [vmem:[#allocation2 + $0x100] sm:$0xff] %vm276_vm3, %v1557_v14 }
  0xa2   : > { %v3818_v54 = vpop.f32.mrf.mxu2  ;;  %v3822_v55 = vpop.f32.mrf.mxu3 }
  0xa3   : > { %v3830_v56 = vpop.f32.mrf.mxu0  ;;  %v3832_v57 = vpop.f32.mrf.mxu1  ;;  %v1589_v18 = vadd.f32 %v3818_v54, %v469_v9  ;;  %v1621_v21 = vadd.f32 %v3822_v55, %v501_v10  ;;  %v3215_v9 = vld [vmem:[%s3542_s7 + $0x158] sm:$0xff] }
  0xa4   : > { %v1526_v23 = vadd.f32 %v3830_v56, %v406_v11  ;;  %v1558_v25 = vadd.f32 %v3832_v57, %v438_v19  ;;  %v3231_v10 = vld [vmem:[%s3542_s7 + $0x1d8] sm:$0xff] }
  0xa5   : > { %v1785_v45 = vld [vmem:[#allocation2] sm:$0xff]  ;;  %1718 = vst.msk [vmem:[#allocation2 + $0x200] sm:$0xff] %vm276_vm3, %v1589_v18 }
  0xa6   : > { %v1917_v46 = vadd.f32 %v3710_v44, %v1785_v45  ;;  %1750 = vst.msk [vmem:[#allocation2 + $0x300] sm:$0xff] %vm276_vm3, %v1621_v21  ;;  %v1817_v43 = vld [vmem:[#allocation2 + $0x100] sm:$0xff] }
  0xa7   : > { %1655 = vst.msk [vmem:[#allocation2 + $0x8] sm:$0xff] %vm276_vm3, %v1526_v23 }
  0xa8   : > { %v2045_v47 = vmax.f32 %v1917_v46, 0.0  ;;  %1687 = vst.msk [vmem:[#allocation2 + $0x108] sm:$0xff] %vm276_vm3, %v1558_v25  ;;  %v1949_v46 = vadd.f32 %v3710_v44, %v1817_v43 }
  0xaa   : > { %v2173_v48 = vpack.c.bf16 %v2045_v47, %v2045_v47  ;;  %v3846_v58 = vpop.f32.mrf.mxu2  ;;  %v3848_v59 = vpop.f32.mrf.mxu3  ;;  %v2077_v54 = vmax.f32 %v1949_v46, 0.0 }
  0xab   : > { %v3854_v60 = vpop.f32.mrf.mxu0  ;;  %v3856_v61 = vpop.f32.mrf.mxu1  ;;  %v1590_v27 = vadd.f32 %v3846_v58, %v470_v22  ;;  %v1622_v31 = vadd.f32 %v3848_v59, %v502_v24 }
  0xac   : > { %2302 = vst.msk [vmem:[%s3734_s12] sm:$0xf] %vm2301_vm4, %v2173_v48  ;;  %v1527_v33 = vadd.f32 %v3854_v60, %v407_v26  ;;  %v1559_v37 = vadd.f32 %v3856_v61, %v439_v28  ;;  %v1849_v47 = vld [vmem:[#allocation2 + $0x200] sm:$0xff] }
  0xad   : > { %1719 = vst.msk [vmem:[#allocation2 + $0x208] sm:$0xff] %vm276_vm3, %v1590_v27  ;;  %v1981_v49 = vadd.f32 %v3710_v44, %v1849_v47  ;;  %v1881_v50 = vld [vmem:[#allocation2 + $0x300] sm:$0xff] }
  0xae   : > { %3100 = vmatmul.msk.bf16.gmra.mxu0 %vm996_vm2, %v3181_v62  ;;  %3116 = vmatmul.msk.bf16.gmra.mxu1 %vm996_vm2, %v3197_v63  ;;  %1751 = vst.msk [vmem:[#allocation2 + $0x308] sm:$0xff] %vm276_vm3, %v1622_v31  ;;  %v2013_v55 = vadd.f32 %v3710_v44, %v1881_v50  ;;  %v1786_v56 = vld [vmem:[#allocation2 + $0x8] sm:$0xff]  ;;  %v2205_v62 = vpack.c.bf16 %v2077_v54, %v2077_v54 }
  0xaf   : > { %3132 = vmatmul.msk.bf16.gmra.mxu2 %vm996_vm2, %v3213_v0  ;;  %3148 = vmatmul.msk.bf16.gmra.mxu3 %vm996_vm2, %v3229_v1  ;;  %1656 = vst.msk [vmem:[#allocation2 + $0x10] sm:$0xff] %vm276_vm3, %v1527_v33  ;;  %v2109_v57 = vmax.f32 %v1981_v49, 0.0  ;;  %v1918_v58 = vadd.f32 %v3710_v44, %v1786_v56  ;;  %v1818_v59 = vld [vmem:[#allocation2 + $0x108] sm:$0xff] }
  0xb0   : > { %1688 = vst.msk [vmem:[#allocation2 + $0x110] sm:$0xff] %vm276_vm3, %v1559_v37  ;;  %v2141_v63 = vmax.f32 %v2013_v55, 0.0  ;;  %v1950_v0 = vadd.f32 %v3710_v44, %v1818_v59  ;;  %v504_v55 = vld [vmem:[#allocation2 + $0x318] sm:$0xff] }
  0xb1   : > { %2334 = vst.msk [vmem:[%s3734_s12 + $0x80] sm:$0xf] %vm2301_vm4, %v2205_v62 }
  0xb2   : > { %v3878_v2 = vpop.f32.mrf.mxu2  ;;  %v3880_v3 = vpop.f32.mrf.mxu3  ;;  %v2269_v11 = vpack.c.bf16 %v2141_v63, %v2141_v63  ;;  %v2078_v14 = vmax.f32 %v1950_v0, 0.0  ;;  %v441_v63 = vld [vmem:[#allocation2 + $0x120] sm:$0xff] }
  0xb3   : > { %v3886_v4 = vpop.f32.mrf.mxu0  ;;  %v3888_v5 = vpop.f32.mrf.mxu1  ;;  %v1591_v39 = vadd.f32 %v3878_v2, %v471_v32  ;;  %v1623_v41 = vadd.f32 %v3880_v3, %v503_v34  ;;  %v3183_v2 = vld [vmem:[%s3542_s7 + $0x58] sm:$0xff] }
  0xb4   : > { %v1528_v45 = vadd.f32 %v3886_v4, %v408_v38  ;;  %v1560_v48 = vadd.f32 %v3888_v5, %v440_v40  ;;  %v1850_v1 = vld [vmem:[#allocation2 + $0x208] sm:$0xff]  ;;  %v3199_v3 = vld [vmem:[%s3542_s7 + $0xd8] sm:$0xff]  ;;  %v2237_v4 = vpack.c.bf16 %v2109_v57, %v2109_v57  ;;  %v2046_v5 = vmax.f32 %v1918_v58, 0.0  ;;  %2398 = vst.msk [vmem:[%s3734_s12 + $0x180] sm:$0xf] %vm2301_vm4, %v2269_v11  ;;  %v409_v58 = vld [vmem:[#allocation2 + $0x20] sm:$0xff] }
  0xb5   : > { %1720 = vst.msk [vmem:[#allocation2 + $0x210] sm:$0xff] %vm276_vm3, %v1591_v39  ;;  %v1882_v8 = vld [vmem:[#allocation2 + $0x308] sm:$0xff]  ;;  %v2206_v21 = vpack.c.bf16 %v2078_v14, %v2078_v14 }
  0xb6   : > { %1752 = vst.msk [vmem:[#allocation2 + $0x310] sm:$0xff] %vm276_vm3, %v1623_v41  ;;  %v474_v14 = vld [vmem:[#allocation2 + $0x228] sm:$0xff] }
  0xb7   : > { %1657 = vst.msk [vmem:[#allocation2 + $0x18] sm:$0xff] %vm276_vm3, %v1528_v45 }
  0xb8   : > { %1689 = vst.msk [vmem:[#allocation2 + $0x118] sm:$0xff] %vm276_vm3, %v1560_v48 }
  0xb9   : > { %2366 = vst.msk [vmem:[%s3734_s12 + $0x100] sm:$0xf] %vm2301_vm4, %v2237_v4 }
  0xba   : > { %v3902_v6 = vpop.f32.mrf.mxu2  ;;  %v3904_v7 = vpop.f32.mrf.mxu3  ;;  %2335 = vst.msk [vmem:[%s3734_s12 + $0x84] sm:$0xf] %vm2301_vm4, %v2206_v21  ;;  %v3216_v21 = vld [vmem:[%s3542_s7 + $0x160] sm:$0xff] }
  0xbb   : > { %v3914_v12 = vpop.f32.mrf.mxu0  ;;  %v3916_v13 = vpop.f32.mrf.mxu1  ;;  %v1592_v51 = vadd.f32 %v3902_v6, %v472_v42  ;;  %v1982_v6 = vadd.f32 %v3710_v44, %v1850_v1  ;;  %v1624_v1 = vadd.f32 %v3904_v7, %v504_v55 }
  0xbc   : > { %v1851_v24 = vld [vmem:[#allocation2 + $0x210] sm:$0xff]  ;;  %v1529_v4 = vadd.f32 %v3914_v12, %v409_v58 }
  0xbd   : > { %1721 = vst.msk [vmem:[#allocation2 + $0x218] sm:$0xff] %vm276_vm3, %v1592_v51  ;;  %v2110_v18 = vmax.f32 %v1982_v6, 0.0  ;;  %v1983_v27 = vadd.f32 %v3710_v44, %v1851_v24  ;;  %v1883_v28 = vld [vmem:[#allocation2 + $0x310] sm:$0xff]  ;;  %v1561_v6 = vadd.f32 %v3916_v13, %v441_v63 }
  0xbe   : > { %3101 = vmatmul.msk.bf16.gmra.mxu0 %vm996_vm2, %v3182_v15  ;;  %3117 = vmatmul.msk.bf16.gmra.mxu1 %vm996_vm2, %v3198_v16  ;;  %v2014_v15 = vadd.f32 %v3710_v44, %v1882_v8  ;;  %v1787_v16 = vld [vmem:[#allocation2 + $0x10] sm:$0xff]  ;;  %v2015_v37 = vadd.f32 %v3710_v44, %v1883_v28  ;;  %v1788_v38 = vld [vmem:[#allocation2 + $0x18] sm:$0xff]  ;;  %v410_v8 = vld [vmem:[#allocation2 + $0x28] sm:$0xff]  ;;  %1753 = vst.msk [vmem:[#allocation2 + $0x318] sm:$0xff] %vm276_vm3, %v1624_v1 }
  0xbf   : > { %3133 = vmatmul.msk.bf16.gmra.mxu2 %vm996_vm2, %v3214_v17  ;;  %3149 = vmatmul.msk.bf16.gmra.mxu3 %vm996_vm2, %v3230_v20  ;;  %v2174_v17 = vpack.c.bf16 %v2046_v5, %v2046_v5  ;;  %v1919_v19 = vadd.f32 %v3710_v44, %v1787_v16  ;;  %v1819_v20 = vld [vmem:[#allocation2 + $0x110] sm:$0xff]  ;;  %v2238_v25 = vpack.c.bf16 %v2110_v18, %v2110_v18  ;;  %v2111_v40 = vmax.f32 %v1983_v27, 0.0  ;;  %v1820_v42 = vld [vmem:[#allocation2 + $0x118] sm:$0xff]  ;;  %v505_v5 = vld [vmem:[#allocation2 + $0x320] sm:$0xff] }
  0xc0   : > { %v2142_v22 = vmax.f32 %v2014_v15, 0.0  ;;  %v1951_v23 = vadd.f32 %v3710_v44, %v1819_v20  ;;  %v1920_v41 = vadd.f32 %v3710_v44, %v1788_v38  ;;  %v2143_v47 = vmax.f32 %v2015_v37, 0.0  ;;  %1658 = vst.msk [vmem:[#allocation2 + $0x20] sm:$0xff] %vm276_vm3, %v1529_v4  ;;  %v506_v15 = vld [vmem:[#allocation2 + $0x328] sm:$0xff]  ;;  %v411_v16 = vld [vmem:[#allocation2 + $0x30] sm:$0xff]  ;;  %v3200_v20 = vld [vmem:[%s3542_s7 + $0xe0] sm:$0xff] }
  0xc1   : > { %2303 = vst.msk [vmem:[%s3734_s12 + $0x4] sm:$0xf] %vm2301_vm4, %v2174_v17  ;;  %v2047_v26 = vmax.f32 %v1919_v19, 0.0  ;;  %v1952_v48 = vadd.f32 %v3710_v44, %v1820_v42  ;;  %v2239_v50 = vpack.c.bf16 %v2111_v40, %v2111_v40  ;;  %v3184_v19 = vld [vmem:[%s3542_s7 + $0x60] sm:$0xff]  ;;  %v475_v24 = vld [vmem:[#allocation2 + $0x230] sm:$0xff] }
  0xc2   : > { %v3942_v29 = vpop.f32.mrf.mxu2  ;;  %v3944_v30 = vpop.f32.mrf.mxu3  ;;  %v2270_v33 = vpack.c.bf16 %v2142_v22, %v2142_v22  ;;  %v2079_v34 = vmax.f32 %v1951_v23, 0.0  ;;  %2367 = vst.msk [vmem:[%s3734_s12 + $0x104] sm:$0xf] %vm2301_vm4, %v2238_v25  ;;  %v2048_v51 = vmax.f32 %v1920_v41, 0.0  ;;  %v2271_v56 = vpack.c.bf16 %v2143_v47, %v2143_v47  ;;  %v443_v22 = vld [vmem:[#allocation2 + $0x130] sm:$0xff]  ;;  %v3232_v23 = vld [vmem:[%s3542_s7 + $0x1e0] sm:$0xff] }
  0xc3   : > { %v3950_v35 = vpop.f32.mrf.mxu0  ;;  %v3952_v36 = vpop.f32.mrf.mxu1  ;;  %v2175_v39 = vpack.c.bf16 %v2047_v26, %v2047_v26  ;;  %v2080_v57 = vmax.f32 %v1952_v48, 0.0  ;;  %2368 = vst.msk [vmem:[%s3734_s12 + $0x108] sm:$0xf] %vm2301_vm4, %v2239_v50  ;;  %v1625_v12 = vadd.f32 %v3944_v30, %v505_v5  ;;  %v507_v25 = vld [vmem:[#allocation2 + $0x330] sm:$0xff]  ;;  %v412_v26 = vld [vmem:[#allocation2 + $0x38] sm:$0xff] }
  0xc4   : > { %2399 = vst.msk [vmem:[%s3734_s12 + $0x184] sm:$0xf] %vm2301_vm4, %v2270_v33  ;;  %v2207_v46 = vpack.c.bf16 %v2079_v34, %v2079_v34  ;;  %v1852_v49 = vld [vmem:[#allocation2 + $0x218] sm:$0xff]  ;;  %v2176_v59 = vpack.c.bf16 %v2048_v51, %v2048_v51  ;;  %v1530_v13 = vadd.f32 %v3950_v35, %v410_v8 }
  0xc5   : > { %2304 = vst.msk [vmem:[%s3734_s12 + $0x8] sm:$0xf] %vm2301_vm4, %v2175_v39  ;;  %v1984_v54 = vadd.f32 %v3710_v44, %v1852_v49  ;;  %v2208_v0 = vpack.c.bf16 %v2080_v57, %v2080_v57 }
  0xc6   : > { %2336 = vst.msk [vmem:[%s3734_s12 + $0x88] sm:$0xf] %vm2301_vm4, %v2207_v46 }
  0xc7   : > { %v2112_v62 = vmax.f32 %v1984_v54, 0.0  ;;  %2400 = vst.msk [vmem:[%s3734_s12 + $0x188] sm:$0xf] %vm2301_vm4, %v2271_v56  ;;  %v1789_v34 = vld [vmem:[#allocation2 + $0x20] sm:$0xff] }
  0xc8   : > { %2305 = vst.msk [vmem:[%s3734_s12 + $0xc] sm:$0xf] %vm2301_vm4, %v2176_v59  ;;  %v1921_v38 = vadd.f32 %v3710_v44, %v1789_v34 }
  0xc9   : > { %2337 = vst.msk [vmem:[%s3734_s12 + $0x8c] sm:$0xf] %vm2301_vm4, %v2208_v0 }
  0xca   : > { %v3968_v52 = vpop.f32.mrf.mxu2  ;;  %v3970_v53 = vpop.f32.mrf.mxu3  ;;  %1690 = vst.msk [vmem:[#allocation2 + $0x120] sm:$0xff] %vm276_vm3, %v1561_v6  ;;  %v2049_v47 = vmax.f32 %v1921_v38, 0.0 }
  0xcb   : > { %v3976_v60 = vpop.f32.mrf.mxu0  ;;  %v3978_v61 = vpop.f32.mrf.mxu1  ;;  %v1594_v30 = vadd.f32 %v3968_v52, %v474_v14  ;;  %1754 = vst.msk [vmem:[#allocation2 + $0x320] sm:$0xff] %vm276_vm3, %v1625_v12  ;;  %v1626_v35 = vadd.f32 %v3970_v53, %v506_v15  ;;  %v1884_v53 = vld [vmem:[#allocation2 + $0x318] sm:$0xff] }
  0xcc   : > { %1659 = vst.msk [vmem:[#allocation2 + $0x28] sm:$0xff] %vm276_vm3, %v1530_v13  ;;  %v1563_v52 = vadd.f32 %v3978_v61, %v443_v22  ;;  %v2177_v54 = vpack.c.bf16 %v2049_v47, %v2049_v47  ;;  %v3185_v22 = vld [vmem:[%s3542_s7 + $0x68] sm:$0xff] }
  0xcd   : > { %1723 = vst.msk [vmem:[#allocation2 + $0x228] sm:$0xff] %vm276_vm3, %v1594_v30 }
  0xce   : > { %3102 = vmatmul.msk.bf16.gmra.mxu0 %vm996_vm2, %v3183_v2  ;;  %3118 = vmatmul.msk.bf16.gmra.mxu1 %vm996_vm2, %v3199_v3  ;;  %v473_v2 = vld [vmem:[#allocation2 + $0x220] sm:$0xff]  ;;  %v2240_v3 = vpack.c.bf16 %v2112_v62, %v2112_v62  ;;  %1755 = vst.msk [vmem:[#allocation2 + $0x328] sm:$0xff] %vm276_vm3, %v1626_v35 }
  0xcf   : > { %3134 = vmatmul.msk.bf16.gmra.mxu2 %vm996_vm2, %v3215_v9  ;;  %3150 = vmatmul.msk.bf16.gmra.mxu3 %vm996_vm2, %v3231_v10  ;;  %v1593_v9 = vadd.f32 %v3942_v29, %v473_v2  ;;  %v442_v10 = vld [vmem:[#allocation2 + $0x128] sm:$0xff]  ;;  %1692 = vst.msk [vmem:[#allocation2 + $0x130] sm:$0xff] %vm276_vm3, %v1563_v52 }
  0xd0   : > { %2369 = vst.msk [vmem:[%s3734_s12 + $0x10c] sm:$0xf] %vm2301_vm4, %v2240_v3  ;;  %v1562_v18 = vadd.f32 %v3952_v36, %v442_v10  ;;  %v1531_v36 = vadd.f32 %v3976_v60, %v411_v16  ;;  %v2016_v60 = vadd.f32 %v3710_v44, %v1884_v53  ;;  %v3217_v52 = vld [vmem:[%s3542_s7 + $0x168] sm:$0xff] }
  0xd1   : > { %1722 = vst.msk [vmem:[#allocation2 + $0x220] sm:$0xff] %vm276_vm3, %v1593_v9  ;;  %v1821_v61 = vld [vmem:[#allocation2 + $0x120] sm:$0xff] }
  0xd2   : > { %v4004_v31 = vpop.f32.mrf.mxu2  ;;  %v4006_v32 = vpop.f32.mrf.mxu3  ;;  %1691 = vst.msk [vmem:[#allocation2 + $0x128] sm:$0xff] %vm276_vm3, %v1562_v18  ;;  %v2144_v41 = vmax.f32 %v2016_v60, 0.0  ;;  %v1953_v42 = vadd.f32 %v3710_v44, %v1821_v61  ;;  %v1885_v48 = vld [vmem:[#allocation2 + $0x320] sm:$0xff] }
  0xd3   : > { %v4014_v43 = vpop.f32.mrf.mxu0  ;;  %v4016_v45 = vpop.f32.mrf.mxu1  ;;  %v1595_v27 = vadd.f32 %v4004_v31, %v475_v24  ;;  %v1627_v37 = vadd.f32 %v4006_v32, %v507_v25  ;;  %1660 = vst.msk [vmem:[#allocation2 + $0x30] sm:$0xff] %vm276_vm3, %v1531_v36  ;;  %v2017_v50 = vadd.f32 %v3710_v44, %v1885_v48  ;;  %v1790_v51 = vld [vmem:[#allocation2 + $0x28] sm:$0xff]  ;;  %v508_v48 = vld [vmem:[#allocation2 + $0x338] sm:$0xff] }
  0xd4   : > { %v1532_v39 = vadd.f32 %v4014_v43, %v412_v26  ;;  %v2272_v49 = vpack.c.bf16 %v2144_v41, %v2144_v41  ;;  %v2081_v43 = vmax.f32 %v1953_v42, 0.0  ;;  %v1922_v56 = vadd.f32 %v3710_v44, %v1790_v51  ;;  %v1854_v63 = vld [vmem:[#allocation2 + $0x228] sm:$0xff]  ;;  %2306 = vst.msk [vmem:[%s3734_s12 + $0x10] sm:$0xf] %vm2301_vm4, %v2177_v54  ;;  %v413_v54 = vld [vmem:[#allocation2 + $0x40] sm:$0xff] }
  0xd5   : > { %1724 = vst.msk [vmem:[#allocation2 + $0x230] sm:$0xff] %vm276_vm3, %v1595_v27  ;;  %v2145_v59 = vmax.f32 %v2017_v50, 0.0  ;;  %v1986_v2 = vadd.f32 %v3710_v44, %v1854_v63  ;;  %v1886_v3 = vld [vmem:[#allocation2 + $0x328] sm:$0xff]  ;;  %v477_v63 = vld [vmem:[#allocation2 + $0x240] sm:$0xff] }
  0xd6   : > { %1756 = vst.msk [vmem:[#allocation2 + $0x330] sm:$0xff] %vm276_vm3, %v1627_v37  ;;  %v2209_v58 = vpack.c.bf16 %v2081_v43, %v2081_v43  ;;  %v2050_v1 = vmax.f32 %v1922_v56, 0.0  ;;  %v2018_v9 = vadd.f32 %v3710_v44, %v1886_v3  ;;  %v1823_v15 = vld [vmem:[#allocation2 + $0x130] sm:$0xff]  ;;  %v3233_v26 = vld [vmem:[%s3542_s7 + $0x1e8] sm:$0xff] }
  0xd7   : > { %1661 = vst.msk [vmem:[#allocation2 + $0x38] sm:$0xff] %vm276_vm3, %v1532_v39  ;;  %v2273_v6 = vpack.c.bf16 %v2145_v59, %v2145_v59  ;;  %v2114_v14 = vmax.f32 %v1986_v2, 0.0  ;;  %v444_v39 = vld [vmem:[#allocation2 + $0x138] sm:$0xff]  ;;  %v446_v3 = vld [vmem:[#allocation2 + $0x148] sm:$0xff] }
  0xd8   : > { %v1853_v46 = vld [vmem:[#allocation2 + $0x220] sm:$0xff]  ;;  %2401 = vst.msk [vmem:[%s3734_s12 + $0x18c] sm:$0xf] %vm2301_vm4, %v2272_v49  ;;  %v2178_v12 = vpack.c.bf16 %v2050_v1, %v2050_v1  ;;  %v1564_v51 = vadd.f32 %v4016_v45, %v444_v39 }
  0xd9   : > { %v1985_v32 = vadd.f32 %v3710_v44, %v1853_v46  ;;  %v1822_v57 = vld [vmem:[#allocation2 + $0x128] sm:$0xff]  ;;  %2338 = vst.msk [vmem:[%s3734_s12 + $0x90] sm:$0xf] %vm2301_vm4, %v2209_v58  ;;  %v2242_v35 = vpack.c.bf16 %v2114_v14, %v2114_v14  ;;  %v476_v46 = vld [vmem:[#allocation2 + $0x238] sm:$0xff]  ;;  %v479_v14 = vld [vmem:[#allocation2 + $0x250] sm:$0xff] }
  0xda   : > { %v4040_v7 = vpop.f32.mrf.mxu2  ;;  %v4042_v11 = vpop.f32.mrf.mxu3  ;;  %v1954_v62 = vadd.f32 %v3710_v44, %v1822_v57  ;;  %v1791_v10 = vld [vmem:[#allocation2 + $0x30] sm:$0xff]  ;;  %2402 = vst.msk [vmem:[%s3734_s12 + $0x190] sm:$0xf] %vm2301_vm4, %v2273_v6  ;;  %v445_v57 = vld [vmem:[#allocation2 + $0x140] sm:$0xff]  ;;  %v478_v6 = vld [vmem:[#allocation2 + $0x248] sm:$0xff] }
  0xdb   : > { %v4048_v29 = vpop.f32.mrf.mxu0  ;;  %v4050_v17 = vpop.f32.mrf.mxu1  ;;  %v2113_v55 = vmax.f32 %v1985_v32, 0.0  ;;  %v1923_v13 = vadd.f32 %v3710_v44, %v1791_v10  ;;  %2307 = vst.msk [vmem:[%s3734_s12 + $0x14] sm:$0xf] %vm2301_vm4, %v2178_v12  ;;  %v1596_v56 = vadd.f32 %v4040_v7, %v476_v46  ;;  %v414_v7 = vld [vmem:[#allocation2 + $0x48] sm:$0xff]  ;;  %v415_v10 = vld [vmem:[#allocation2 + $0x50] sm:$0xff] }
  0xdc   : > { %v2082_v8 = vmax.f32 %v1954_v62, 0.0  ;;  %v1855_v30 = vld [vmem:[#allocation2 + $0x230] sm:$0xff]  ;;  %2371 = vst.msk [vmem:[%s3734_s12 + $0x114] sm:$0xf] %vm2301_vm4, %v2242_v35  ;;  %v1628_v62 = vadd.f32 %v4042_v11, %v508_v48  ;;  %v1533_v45 = vadd.f32 %v4048_v29, %v413_v54  ;;  %v1565_v1 = vadd.f32 %v4050_v17, %v445_v57 }
  0xdd   : > { %v2241_v0 = vpack.c.bf16 %v2113_v55, %v2113_v55  ;;  %v2051_v24 = vmax.f32 %v1923_v13, 0.0  ;;  %v1987_v36 = vadd.f32 %v3710_v44, %v1855_v30  ;;  %v1887_v25 = vld [vmem:[#allocation2 + $0x330] sm:$0xff]  ;;  %1693 = vst.msk [vmem:[#allocation2 + $0x138] sm:$0xff] %vm276_vm3, %v1564_v51 }
  0xde   : > { %3103 = vmatmul.msk.bf16.gmra.mxu0 %vm996_vm2, %v3184_v19  ;;  %3119 = vmatmul.msk.bf16.gmra.mxu1 %vm996_vm2, %v3200_v20  ;;  %v2210_v19 = vpack.c.bf16 %v2082_v8, %v2082_v8  ;;  %v2146_v20 = vmax.f32 %v2018_v9, 0.0  ;;  %v2019_v60 = vadd.f32 %v3710_v44, %v1887_v25  ;;  %v1792_v34 = vld [vmem:[#allocation2 + $0x38] sm:$0xff]  ;;  %1725 = vst.msk [vmem:[#allocation2 + $0x238] sm:$0xff] %vm276_vm3, %v1596_v56  ;;  %v510_v8 = vld [vmem:[#allocation2 + $0x348] sm:$0xff]  ;;  %v447_v12 = vld [vmem:[#allocation2 + $0x150] sm:$0xff] }
  0xdf   : > { %3135 = vmatmul.msk.bf16.gmra.mxu2 %vm996_vm2, %v3216_v21  ;;  %3151 = vmatmul.msk.bf16.gmra.mxu3 %vm996_vm2, %v3232_v23  ;;  %2370 = vst.msk [vmem:[%s3734_s12 + $0x110] sm:$0xf] %vm2301_vm4, %v2241_v0  ;;  %v1955_v21 = vadd.f32 %v3710_v44, %v1823_v15  ;;  %v3201_v23 = vld [vmem:[%s3542_s7 + $0xe8] sm:$0xff]  ;;  %v2179_v37 = vpack.c.bf16 %v2051_v24, %v2051_v24  ;;  %v2115_v38 = vmax.f32 %v1987_v36, 0.0  ;;  %v509_v0 = vld [vmem:[#allocation2 + $0x340] sm:$0xff] }
  0xe0   : > { %2339 = vst.msk [vmem:[%s3734_s12 + $0x94] sm:$0xf] %vm2301_vm4, %v2210_v19  ;;  %v2274_v53 = vpack.c.bf16 %v2146_v20, %v2146_v20  ;;  %v1924_v61 = vadd.f32 %v3710_v44, %v1792_v34  ;;  %v2147_v42 = vmax.f32 %v2019_v60, 0.0  ;;  %v3186_v19 = vld [vmem:[%s3542_s7 + $0x70] sm:$0xff] }
  0xe1   : > { %v2083_v27 = vmax.f32 %v1955_v21, 0.0  ;;  %2308 = vst.msk [vmem:[%s3734_s12 + $0x18] sm:$0xf] %vm2301_vm4, %v2179_v37  ;;  %v2243_v47 = vpack.c.bf16 %v2115_v38, %v2115_v38  ;;  %v3202_v20 = vld [vmem:[%s3542_s7 + $0xf0] sm:$0xff] }
  0xe2   : > { %v4072_v28 = vpop.f32.mrf.mxu2  ;;  %v4074_v33 = vpop.f32.mrf.mxu3  ;;  %2403 = vst.msk [vmem:[%s3734_s12 + $0x194] sm:$0xf] %vm2301_vm4, %v2274_v53  ;;  %v2052_v32 = vmax.f32 %v1924_v61, 0.0  ;;  %v2275_v50 = vpack.c.bf16 %v2147_v42, %v2147_v42  ;;  %v3218_v21 = vld [vmem:[%s3542_s7 + $0x170] sm:$0xff] }
  0xe3   : > { %v4082_v40 = vpop.f32.mrf.mxu0  ;;  %v4084_v31 = vpop.f32.mrf.mxu1  ;;  %v2211_v41 = vpack.c.bf16 %v2083_v27, %v2083_v27  ;;  %2372 = vst.msk [vmem:[%s3734_s12 + $0x118] sm:$0xf] %vm2301_vm4, %v2243_v47  ;;  %v1597_v2 = vadd.f32 %v4072_v28, %v477_v63  ;;  %v1629_v11 = vadd.f32 %v4074_v33, %v509_v0 }
  0xe4   : > { %v2180_v55 = vpack.c.bf16 %v2052_v32, %v2052_v32  ;;  %2404 = vst.msk [vmem:[%s3734_s12 + $0x198] sm:$0xf] %vm2301_vm4, %v2275_v50  ;;  %v1534_v29 = vadd.f32 %v4082_v40, %v414_v7  ;;  %v1566_v28 = vadd.f32 %v4084_v31, %v446_v3  ;;  %v1824_v31 = vld [vmem:[#allocation2 + $0x138] sm:$0xff] }
  0xe5   : > { %2340 = vst.msk [vmem:[%s3734_s12 + $0x98] sm:$0xf] %vm2301_vm4, %v2211_v41 }
  0xe6   : > { %2309 = vst.msk [vmem:[%s3734_s12 + $0x1c] sm:$0xf] %vm2301_vm4, %v2180_v55 }
  0xe7   : > { %1757 = vst.msk [vmem:[#allocation2 + $0x338] sm:$0xff] %vm276_vm3, %v1628_v62 }
  0xe8   : > { %1662 = vst.msk [vmem:[#allocation2 + $0x40] sm:$0xff] %vm276_vm3, %v1533_v45 }
  0xe9   : > { %1694 = vst.msk [vmem:[#allocation2 + $0x140] sm:$0xff] %vm276_vm3, %v1565_v1 }
  0xea   : > { %v4100_v4 = vpop.f32.mrf.mxu2  ;;  %v4102_v5 = vpop.f32.mrf.mxu3  ;;  %1726 = vst.msk [vmem:[#allocation2 + $0x240] sm:$0xff] %vm276_vm3, %v1597_v2 }
  0xeb   : > { %v4110_v16 = vpop.f32.mrf.mxu0  ;;  %v4112_v18 = vpop.f32.mrf.mxu1  ;;  %v1598_v33 = vadd.f32 %v4100_v4, %v478_v6  ;;  %1758 = vst.msk [vmem:[#allocation2 + $0x340] sm:$0xff] %vm276_vm3, %v1629_v11  ;;  %v1630_v15 = vadd.f32 %v4102_v5, %v510_v8  ;;  %v1956_v4 = vadd.f32 %v3710_v44, %v1824_v31 }
  0xec   : > { %1663 = vst.msk [vmem:[#allocation2 + $0x48] sm:$0xff] %vm276_vm3, %v1534_v29  ;;  %v1535_v30 = vadd.f32 %v4110_v16, %v415_v10  ;;  %v1567_v35 = vadd.f32 %v4112_v18, %v447_v12 }
  0xed   : > { %1695 = vst.msk [vmem:[#allocation2 + $0x148] sm:$0xff] %vm276_vm3, %v1566_v28  ;;  %v2084_v16 = vmax.f32 %v1956_v4, 0.0 }
  0xee   : > { %3104 = vmatmul.msk.bf16.gmra.mxu0 %vm996_vm2, %v3185_v22  ;;  %3120 = vmatmul.msk.bf16.gmra.mxu1 %vm996_vm2, %v3201_v23  ;;  %v3234_v22 = vld [vmem:[%s3542_s7 + $0x1f0] sm:$0xff]  ;;  %v1856_v23 = vld [vmem:[#allocation2 + $0x238] sm:$0xff]  ;;  %1727 = vst.msk [vmem:[#allocation2 + $0x248] sm:$0xff] %vm276_vm3, %v1598_v33 }
  0xef   : > { %3136 = vmatmul.msk.bf16.gmra.mxu2 %vm996_vm2, %v3217_v52  ;;  %3152 = vmatmul.msk.bf16.gmra.mxu3 %vm996_vm2, %v3233_v26  ;;  %v1988_v5 = vadd.f32 %v3710_v44, %v1856_v23  ;;  %v1888_v24 = vld [vmem:[#allocation2 + $0x338] sm:$0xff]  ;;  %v1793_v52 = vld [vmem:[#allocation2 + $0x40] sm:$0xff]  ;;  %1759 = vst.msk [vmem:[#allocation2 + $0x348] sm:$0xff] %vm276_vm3, %v1630_v15  ;;  %v2212_v34 = vpack.c.bf16 %v2084_v16, %v2084_v16  ;;  %v511_v23 = vld [vmem:[#allocation2 + $0x350] sm:$0xff] }
  0xf0   : > { %v2020_v25 = vadd.f32 %v3710_v44, %v1888_v24  ;;  %v1925_v26 = vadd.f32 %v3710_v44, %v1793_v52  ;;  %v1825_v53 = vld [vmem:[#allocation2 + $0x140] sm:$0xff]  ;;  %1664 = vst.msk [vmem:[#allocation2 + $0x50] sm:$0xff] %vm276_vm3, %v1535_v30  ;;  %v416_v16 = vld [vmem:[#allocation2 + $0x58] sm:$0xff] }
  0xf1   : > { %v2116_v18 = vmax.f32 %v1988_v5, 0.0  ;;  %v1957_v38 = vadd.f32 %v3710_v44, %v1825_v53  ;;  %v1857_v61 = vld [vmem:[#allocation2 + $0x240] sm:$0xff]  ;;  %1696 = vst.msk [vmem:[#allocation2 + $0x150] sm:$0xff] %vm276_vm3, %v1567_v35  ;;  %v3203_v52 = vld [vmem:[%s3542_s7 + $0xf8] sm:$0xff] }
  0xf2   : > { %v1390_v49 = vpop.f32.mrf.mxu2  ;;  %v4138_v43 = vpop.f32.mrf.mxu3  ;;  %v2148_v37 = vmax.f32 %v2020_v25, 0.0  ;;  %v2053_v41 = vmax.f32 %v1925_v26, 0.0  ;;  %v1989_v42 = vadd.f32 %v3710_v44, %v1857_v61  ;;  %v1889_v46 = vld [vmem:[#allocation2 + $0x340] sm:$0xff]  ;;  %2341 = vst.msk [vmem:[%s3734_s12 + $0x9c] sm:$0xf] %vm2301_vm4, %v2212_v34  ;;  %v3187_v25 = vld [vmem:[%s3542_s7 + $0x78] sm:$0xff] }
  0xf3   : > { %v4146_v58 = vpop.f32.mrf.mxu0  ;;  %v4148_v59 = vpop.f32.mrf.mxu1  ;;  %v1599_v36 = vadd.f32 %v1390_v49, %v479_v14  ;;  %v2244_v39 = vpack.c.bf16 %v2116_v18, %v2116_v18  ;;  %v2085_v49 = vmax.f32 %v1957_v38, 0.0  ;;  %v2021_v50 = vadd.f32 %v3710_v44, %v1889_v46  ;;  %v1794_v51 = vld [vmem:[#allocation2 + $0x48] sm:$0xff]  ;;  %v448_v53 = vld [vmem:[#allocation2 + $0x158] sm:$0xff] }
  0xf4   : > { %v2276_v48 = vpack.c.bf16 %v2148_v37, %v2148_v37  ;;  %v2181_v54 = vpack.c.bf16 %v2053_v41, %v2053_v41  ;;  %v2117_v55 = vmax.f32 %v1989_v42, 0.0  ;;  %v1926_v56 = vadd.f32 %v3710_v44, %v1794_v51  ;;  %v1826_v57 = vld [vmem:[#allocation2 + $0x148] sm:$0xff]  ;;  %v3219_v34 = vld [vmem:[%s3542_s7 + $0x178] sm:$0xff] }
  0xf5   : > { %1728 = vst.msk [vmem:[#allocation2 + $0x250] sm:$0xff] %vm276_vm3, %v1599_v36  ;;  %v2213_v62 = vpack.c.bf16 %v2085_v49, %v2085_v49  ;;  %v2149_v63 = vmax.f32 %v2021_v50, 0.0  ;;  %v1958_v45 = vadd.f32 %v3710_v44, %v1826_v57  ;;  %v1858_v0 = vld [vmem:[#allocation2 + $0x248] sm:$0xff]  ;;  %v3235_v37 = vld [vmem:[%s3542_s7 + $0x1f8] sm:$0xff]  ;;  %v1631_v61 = vadd.f32 %v4138_v43, %v511_v23  ;;  %v417_v49 = vld [vmem:[#allocation2 + $0x60] sm:$0xff] }
  0xf6   : > { %2373 = vst.msk [vmem:[%s3734_s12 + $0x11c] sm:$0xf] %vm2301_vm4, %v2244_v39  ;;  %v2245_v1 = vpack.c.bf16 %v2117_v55, %v2117_v55  ;;  %v2054_v7 = vmax.f32 %v1926_v56, 0.0  ;;  %v1990_v2 = vadd.f32 %v3710_v44, %v1858_v0  ;;  %v1890_v3 = vld [vmem:[#allocation2 + $0x348] sm:$0xff]  ;;  %v480_v39 = vld [vmem:[#allocation2 + $0x258] sm:$0xff]  ;;  %v1536_v42 = vadd.f32 %v4146_v58, %v416_v16  ;;  %v449_v50 = vld [vmem:[#allocation2 + $0x160] sm:$0xff] }
  0xf7   : > { %2405 = vst.msk [vmem:[%s3734_s12 + $0x19c] sm:$0xf] %vm2301_vm4, %v2276_v48  ;;  %v2277_v11 = vpack.c.bf16 %v2149_v63, %v2149_v63  ;;  %v2086_v6 = vmax.f32 %v1958_v45, 0.0  ;;  %v2022_v29 = vadd.f32 %v3710_v44, %v1890_v3  ;;  %v1795_v8 = vld [vmem:[#allocation2 + $0x50] sm:$0xff]  ;;  %v512_v46 = vld [vmem:[#allocation2 + $0x358] sm:$0xff]  ;;  %v1568_v48 = vadd.f32 %v4148_v59, %v448_v53  ;;  %v481_v55 = vld [vmem:[#allocation2 + $0x260] sm:$0xff] }
  0xf8   : > { %2310 = vst.msk [vmem:[%s3734_s12 + $0x20] sm:$0xf] %vm2301_vm4, %v2181_v54  ;;  %v2182_v28 = vpack.c.bf16 %v2054_v7, %v2054_v7  ;;  %v2118_v10 = vmax.f32 %v1990_v2, 0.0  ;;  %v1927_v33 = vadd.f32 %v3710_v44, %v1795_v8  ;;  %v1827_v12 = vld [vmem:[#allocation2 + $0x150] sm:$0xff]  ;;  %v513_v56 = vld [vmem:[#allocation2 + $0x360] sm:$0xff]  ;;  %v418_v63 = vld [vmem:[#allocation2 + $0x68] sm:$0xff] }
  0xf9   : > { %2342 = vst.msk [vmem:[%s3734_s12 + $0xa0] sm:$0xf] %vm2301_vm4, %v2213_v62  ;;  %v514_v7 = vld [vmem:[#allocation2 + $0x368] sm:$0xff]  ;;  %v419_v2 = vld [vmem:[#allocation2 + $0x70] sm:$0xff] }
  0xfa   : > { %v4164_v17 = vpop.f32.mrf.mxu2  ;;  %v4166_v9 = vpop.f32.mrf.mxu3  ;;  %2374 = vst.msk [vmem:[%s3734_s12 + $0x120] sm:$0xf] %vm2301_vm4, %v2245_v1  ;;  %v2246_v30 = vpack.c.bf16 %v2118_v10, %v2118_v10 }
  0xfb   : > { %v4172_v40 = vpop.f32.mrf.mxu0  ;;  %v4174_v13 = vpop.f32.mrf.mxu1  ;;  %2406 = vst.msk [vmem:[%s3734_s12 + $0x1a0] sm:$0xf] %vm2301_vm4, %v2277_v11  ;;  %v1600_v43 = vadd.f32 %v4164_v17, %v480_v39  ;;  %v1632_v58 = vadd.f32 %v4166_v9, %v512_v46  ;;  %v450_v9 = vld [vmem:[#allocation2 + $0x168] sm:$0xff] }
  0xfc   : > { %v1859_v31 = vld [vmem:[#allocation2 + $0x250] sm:$0xff]  ;;  %2311 = vst.msk [vmem:[%s3734_s12 + $0x24] sm:$0xf] %vm2301_vm4, %v2182_v28  ;;  %v1537_v59 = vadd.f32 %v4172_v40, %v417_v49  ;;  %v1569_v17 = vadd.f32 %v4174_v13, %v449_v50  ;;  %v482_v40 = vld [vmem:[#allocation2 + $0x268] sm:$0xff] }
  0xfd   : > { %2375 = vst.msk [vmem:[%s3734_s12 + $0x124] sm:$0xf] %vm2301_vm4, %v2246_v30 }
  0xfe   : > { %3105 = vmatmul.msk.bf16.gmra.mxu0 %vm996_vm2, %v3186_v19  ;;  %3121 = vmatmul.msk.bf16.gmra.mxu1 %vm996_vm2, %v3202_v20  ;;  %v2214_v19 = vpack.c.bf16 %v2086_v6, %v2086_v6  ;;  %v2150_v20 = vmax.f32 %v2022_v29, 0.0  ;;  %1760 = vst.msk [vmem:[#allocation2 + $0x350] sm:$0xff] %vm276_vm3, %v1631_v61 }
  0xff   : > { %3137 = vmatmul.msk.bf16.gmra.mxu2 %vm996_vm2, %v3218_v21  ;;  %3153 = vmatmul.msk.bf16.gmra.mxu3 %vm996_vm2, %v3234_v22  ;;  %v4236_v21 = vld [vmem:[%s4931_s2] ss:$0 sm:$0xff]  ;;  %v2055_v22 = vmax.f32 %v1927_v33, 0.0  ;;  %1665 = vst.msk [vmem:[#allocation2 + $0x58] sm:$0xff] %vm276_vm3, %v1536_v42 }
 0x100   : > { %v1959_v44 = vadd.f32 %v4236_v21, %v1827_v12  ;;  %v1991_v4 = vadd.f32 %v4236_v21, %v1859_v31  ;;  %2343 = vst.msk [vmem:[%s3734_s12 + $0xa4] sm:$0xf] %vm2301_vm4, %v2214_v19  ;;  %v2278_v24 = vpack.c.bf16 %v2150_v20, %v2150_v20 }
 0x101   : > { %v2183_v18 = vpack.c.bf16 %v2055_v22, %v2055_v22  ;;  %1697 = vst.msk [vmem:[#allocation2 + $0x158] sm:$0xff] %vm276_vm3, %v1568_v48 }
 0x102   : > { %v4197_v27 = vpop.f32.mrf.mxu2  ;;  %v4199_v60 = vpop.f32.mrf.mxu3  ;;  %v2087_v36 = vmax.f32 %v1959_v44, 0.0  ;;  %v2119_v26 = vmax.f32 %v1991_v4, 0.0  ;;  %2407 = vst.msk [vmem:[%s3734_s12 + $0x1a4] sm:$0xf] %vm2301_vm4, %v2278_v24 }
 0x103   : > { %v4205_v47 = vpop.f32.mrf.mxu0  ;;  %v4207_v32 = vpop.f32.mrf.mxu1  ;;  %2312 = vst.msk [vmem:[%s3734_s12 + $0x28] sm:$0xf] %vm2301_vm4, %v2183_v18  ;;  %v1601_v45 = vadd.f32 %v4197_v27, %v481_v55  ;;  %v1633_v0 = vadd.f32 %v4199_v60, %v513_v56 }
 0x104   : > { %v2215_v38 = vpack.c.bf16 %v2087_v36, %v2087_v36  ;;  %v2247_v41 = vpack.c.bf16 %v2119_v26, %v2119_v26  ;;  %1729 = vst.msk [vmem:[#allocation2 + $0x258] sm:$0xff] %vm276_vm3, %v1600_v43  ;;  %v1538_v1 = vadd.f32 %v4205_v47, %v418_v63  ;;  %v1570_v13 = vadd.f32 %v4207_v32, %v450_v9 }
 0x105   : > { %1761 = vst.msk [vmem:[#allocation2 + $0x358] sm:$0xff] %vm276_vm3, %v1632_v58  ;;  %v1891_v3 = vld [vmem:[#allocation2 + $0x350] sm:$0xff] }
 0x106   : > { %2344 = vst.msk [vmem:[%s3734_s12 + $0xa8] sm:$0xf] %vm2301_vm4, %v2215_v38  ;;  %v2023_v60 = vadd.f32 %v4236_v21, %v1891_v3  ;;  %v1796_v29 = vld [vmem:[#allocation2 + $0x58] sm:$0xff] }
 0x107   : > { %2376 = vst.msk [vmem:[%s3734_s12 + $0x128] sm:$0xf] %vm2301_vm4, %v2247_v41  ;;  %v1928_v8 = vadd.f32 %v4236_v21, %v1796_v29  ;;  %v451_v29 = vld [vmem:[#allocation2 + $0x170] sm:$0xff] }
 0x108   : > { %1666 = vst.msk [vmem:[#allocation2 + $0x60] sm:$0xff] %vm276_vm3, %v1537_v59  ;;  %v1828_v32 = vld [vmem:[#allocation2 + $0x158] sm:$0xff]  ;;  %v2151_v12 = vmax.f32 %v2023_v60, 0.0 }
 0x109   : > { %1698 = vst.msk [vmem:[#allocation2 + $0x160] sm:$0xff] %vm276_vm3, %v1569_v17  ;;  %v2056_v20 = vmax.f32 %v1928_v8, 0.0 }
 0x10a   : > { %v4227_v14 = vpop.f32.mrf.mxu2  ;;  %v4229_v15 = vpop.f32.mrf.mxu3  ;;  %1730 = vst.msk [vmem:[#allocation2 + $0x260] sm:$0xff] %vm276_vm3, %v1601_v45  ;;  %v2279_v31 = vpack.c.bf16 %v2151_v12, %v2151_v12 }
 0x10b   : > { %v4242_v35 = vpop.f32.mrf.mxu0  ;;  %v4244_v5 = vpop.f32.mrf.mxu1  ;;  %v1602_v27 = vadd.f32 %v4227_v14, %v482_v40  ;;  %1762 = vst.msk [vmem:[#allocation2 + $0x360] sm:$0xff] %vm276_vm3, %v1633_v0  ;;  %v1634_v47 = vadd.f32 %v4229_v15, %v514_v7  ;;  %v1960_v14 = vadd.f32 %v4236_v21, %v1828_v32  ;;  %v1860_v19 = vld [vmem:[#allocation2 + $0x258] sm:$0xff]  ;;  %v2184_v23 = vpack.c.bf16 %v2056_v20, %v2056_v20  ;;  %v483_v32 = vld [vmem:[#allocation2 + $0x270] sm:$0xff] }
 0x10c   : > { %1667 = vst.msk [vmem:[#allocation2 + $0x68] sm:$0xff] %vm276_vm3, %v1538_v1  ;;  %v1539_v28 = vadd.f32 %v4242_v35, %v419_v2  ;;  %v1992_v15 = vadd.f32 %v4236_v21, %v1860_v19  ;;  %v1892_v44 = vld [vmem:[#allocation2 + $0x358] sm:$0xff] }
 0x10d   : > { %1699 = vst.msk [vmem:[#allocation2 + $0x168] sm:$0xff] %vm276_vm3, %v1570_v13  ;;  %v2088_v30 = vmax.f32 %v1960_v14, 0.0  ;;  %v2024_v22 = vadd.f32 %v4236_v21, %v1892_v44  ;;  %v515_v14 = vld [vmem:[#allocation2 + $0x370] sm:$0xff]  ;;  %v1571_v44 = vadd.f32 %v4244_v5, %v451_v29 }
 0x10e   : > { %3106 = vmatmul.msk.bf16.gmra.mxu0 %vm996_vm2, %v3187_v25  ;;  %3122 = vmatmul.msk.bf16.gmra.mxu1 %vm996_vm2, %v3203_v52  ;;  %1731 = vst.msk [vmem:[#allocation2 + $0x268] sm:$0xff] %vm276_vm3, %v1602_v27  ;;  %v2120_v35 = vmax.f32 %v1992_v15, 0.0 }
 0x10f   : > { %3138 = vmatmul.msk.bf16.gmra.mxu2 %vm996_vm2, %v3219_v34  ;;  %3154 = vmatmul.msk.bf16.gmra.mxu3 %vm996_vm2, %v3235_v37  ;;  %v1797_v4 = vld [vmem:[#allocation2 + $0x60] sm:$0xff]  ;;  %1763 = vst.msk [vmem:[#allocation2 + $0x368] sm:$0xff] %vm276_vm3, %v1634_v47  ;;  %v2216_v16 = vpack.c.bf16 %v2088_v30, %v2088_v30  ;;  %v2152_v25 = vmax.f32 %v2024_v22, 0.0 }
 0x110   : > { %v1929_v24 = vadd.f32 %v4236_v21, %v1797_v4  ;;  %v1829_v36 = vld [vmem:[#allocation2 + $0x160] sm:$0xff]  ;;  %1668 = vst.msk [vmem:[#allocation2 + $0x70] sm:$0xff] %vm276_vm3, %v1539_v28  ;;  %v2248_v26 = vpack.c.bf16 %v2120_v35, %v2120_v35  ;;  %v452_v4 = vld [vmem:[#allocation2 + $0x178] sm:$0xff] }
 0x111   : > { %2408 = vst.msk [vmem:[%s3734_s12 + $0x1a8] sm:$0xf] %vm2301_vm4, %v2279_v31  ;;  %v1961_v52 = vadd.f32 %v4236_v21, %v1829_v36  ;;  %v1861_v18 = vld [vmem:[#allocation2 + $0x260] sm:$0xff]  ;;  %v2280_v39 = vpack.c.bf16 %v2152_v25, %v2152_v25  ;;  %v420_v31 = vld [vmem:[#allocation2 + $0x78] sm:$0xff] }
 0x112   : > { %v4270_v51 = vpop.f32.mrf.mxu2  ;;  %v4272_v54 = vpop.f32.mrf.mxu3  ;;  %2313 = vst.msk [vmem:[%s3734_s12 + $0x2c] sm:$0xf] %vm2301_vm4, %v2184_v23  ;;  %v2057_v53 = vmax.f32 %v1929_v24, 0.0  ;;  %v1993_v34 = vadd.f32 %v4236_v21, %v1861_v18  ;;  %v1893_v37 = vld [vmem:[#allocation2 + $0x360] sm:$0xff]  ;;  %v484_v36 = vld [vmem:[#allocation2 + $0x278] sm:$0xff] }
 0x113   : > { %v4278_v57 = vpop.f32.mrf.mxu0  ;;  %v4280_v62 = vpop.f32.mrf.mxu1  ;;  %2345 = vst.msk [vmem:[%s3734_s12 + $0xac] sm:$0xf] %vm2301_vm4, %v2216_v16  ;;  %v2089_v41 = vmax.f32 %v1961_v52, 0.0  ;;  %v2025_v42 = vadd.f32 %v4236_v21, %v1893_v37  ;;  %v1798_v46 = vld [vmem:[#allocation2 + $0x68] sm:$0xff]  ;;  %v1603_v22 = vadd.f32 %v4270_v51, %v483_v32  ;;  %v1635_v24 = vadd.f32 %v4272_v54, %v515_v14  ;;  %v516_v16 = vld [vmem:[#allocation2 + $0x378] sm:$0xff]  ;;  %v421_v51 = vld [vmem:[#allocation2 + $0x80] sm:$0xff] }
 0x114   : > { %2377 = vst.msk [vmem:[%s3734_s12 + $0x12c] sm:$0xf] %vm2301_vm4, %v2248_v26  ;;  %v2185_v48 = vpack.c.bf16 %v2057_v53, %v2057_v53  ;;  %v2121_v49 = vmax.f32 %v1993_v34, 0.0  ;;  %v1930_v43 = vadd.f32 %v4236_v21, %v1798_v46  ;;  %v1830_v50 = vld [vmem:[#allocation2 + $0x168] sm:$0xff]  ;;  %v1540_v5 = vadd.f32 %v4278_v57, %v420_v31  ;;  %v453_v18 = vld [vmem:[#allocation2 + $0x180] sm:$0xff] }
 0x115   : > { %2409 = vst.msk [vmem:[%s3734_s12 + $0x1ac] sm:$0xf] %vm2301_vm4, %v2280_v39  ;;  %v2217_v59 = vpack.c.bf16 %v2089_v41, %v2089_v41  ;;  %v2153_v56 = vmax.f32 %v2025_v42, 0.0  ;;  %v1962_v17 = vadd.f32 %v4236_v21, %v1830_v50  ;;  %v1862_v63 = vld [vmem:[#allocation2 + $0x268] sm:$0xff]  ;;  %v1572_v25 = vadd.f32 %v4280_v62, %v452_v4  ;;  %v485_v26 = vld [vmem:[#allocation2 + $0x280] sm:$0xff] }
 0x116   : > { %2314 = vst.msk [vmem:[%s3734_s12 + $0x30] sm:$0xf] %vm2301_vm4, %v2185_v48  ;;  %v2249_v45 = vpack.c.bf16 %v2121_v49, %v2121_v49  ;;  %v2058_v9 = vmax.f32 %v1930_v43, 0.0  ;;  %v1994_v0 = vadd.f32 %v4236_v21, %v1862_v63  ;;  %v1894_v40 = vld [vmem:[#allocation2 + $0x368] sm:$0xff]  ;;  %v517_v53 = vld [vmem:[#allocation2 + $0x380] sm:$0xff] }
 0x117   : > { %2346 = vst.msk [vmem:[%s3734_s12 + $0xb0] sm:$0xf] %vm2301_vm4, %v2217_v59  ;;  %v2281_v1 = vpack.c.bf16 %v2153_v56, %v2153_v56  ;;  %v2090_v7 = vmax.f32 %v1962_v17, 0.0  ;;  %v2026_v13 = vadd.f32 %v4236_v21, %v1894_v40  ;;  %v1799_v2 = vld [vmem:[#allocation2 + $0x70] sm:$0xff]  ;;  %v486_v46 = vld [vmem:[#allocation2 + $0x288] sm:$0xff] }
 0x118   : > { %2378 = vst.msk [vmem:[%s3734_s12 + $0x130] sm:$0xf] %vm2301_vm4, %v2249_v45  ;;  %v2186_v3 = vpack.c.bf16 %v2058_v9, %v2058_v9  ;;  %v2122_v27 = vmax.f32 %v1994_v0, 0.0  ;;  %v1931_v60 = vadd.f32 %v4236_v21, %v1799_v2 }
 0x119   : > { %2410 = vst.msk [vmem:[%s3734_s12 + $0x1b0] sm:$0xf] %vm2301_vm4, %v2281_v1  ;;  %v2218_v47 = vpack.c.bf16 %v2090_v7, %v2090_v7  ;;  %v2154_v8 = vmax.f32 %v2026_v13, 0.0 }
 0x11a   : > { %v4294_v11 = vpop.f32.mrf.mxu2  ;;  %v4296_v6 = vpop.f32.mrf.mxu3  ;;  %2315 = vst.msk [vmem:[%s3734_s12 + $0x34] sm:$0xf] %vm2301_vm4, %v2186_v3  ;;  %v2250_v28 = vpack.c.bf16 %v2122_v27, %v2122_v27  ;;  %v2059_v12 = vmax.f32 %v1931_v60, 0.0 }
 0x11b   : > { %v4304_v10 = vpop.f32.mrf.mxu0  ;;  %v4306_v33 = vpop.f32.mrf.mxu1  ;;  %2347 = vst.msk [vmem:[%s3734_s12 + $0xb4] sm:$0xf] %vm2301_vm4, %v2218_v47  ;;  %v2282_v15 = vpack.c.bf16 %v2154_v8, %v2154_v8  ;;  %v1604_v52 = vadd.f32 %v4294_v11, %v484_v36  ;;  %v1636_v54 = vadd.f32 %v4296_v6, %v516_v16  ;;  %v422_v11 = vld [vmem:[#allocation2 + $0x88] sm:$0xff] }
 0x11c   : > { %2379 = vst.msk [vmem:[%s3734_s12 + $0x134] sm:$0xf] %vm2301_vm4, %v2250_v28  ;;  %v2187_v30 = vpack.c.bf16 %v2059_v12, %v2059_v12  ;;  %v1541_v57 = vadd.f32 %v4304_v10, %v421_v51  ;;  %v1573_v62 = vadd.f32 %v4306_v33, %v453_v18  ;;  %v454_v6 = vld [vmem:[#allocation2 + $0x188] sm:$0xff] }
 0x11d   : > { %2411 = vst.msk [vmem:[%s3734_s12 + $0x1b4] sm:$0xf] %vm2301_vm4, %v2282_v15 }
 0x11e   : > { %2316 = vst.msk [vmem:[%s3734_s12 + $0x38] sm:$0xf] %vm2301_vm4, %v2187_v30 }
 0x11f   : > { %1700 = vst.msk [vmem:[#allocation2 + $0x170] sm:$0xff] %vm276_vm3, %v1571_v44 }
 0x120   : > { %1732 = vst.msk [vmem:[#allocation2 + $0x270] sm:$0xff] %vm276_vm3, %v1603_v22 }
 0x121   : > { %1764 = vst.msk [vmem:[#allocation2 + $0x370] sm:$0xff] %vm276_vm3, %v1635_v24 }
 0x122   : > { %v4322_v38 = vpop.f32.mrf.mxu2  ;;  %v4324_v61 = vpop.f32.mrf.mxu3  ;;  %1669 = vst.msk [vmem:[#allocation2 + $0x78] sm:$0xff] %vm276_vm3, %v1540_v5 }
 0x123   : > { %v4332_v58 = vpop.f32.mrf.mxu0  ;;  %v4334_v55 = vpop.f32.mrf.mxu1  ;;  %1701 = vst.msk [vmem:[#allocation2 + $0x178] sm:$0xff] %vm276_vm3, %v1572_v25  ;;  %v1605_v39 = vadd.f32 %v4322_v38, %v485_v26  ;;  %v1637_v10 = vadd.f32 %v4324_v61, %v517_v53 }
 0x124   : > { %1733 = vst.msk [vmem:[#allocation2 + $0x278] sm:$0xff] %vm276_vm3, %v1604_v52  ;;  %v1542_v33 = vadd.f32 %v4332_v58, %v422_v11  ;;  %v1574_v38 = vadd.f32 %v4334_v55, %v454_v6 }
 0x125   : > { %1765 = vst.msk [vmem:[#allocation2 + $0x378] sm:$0xff] %vm276_vm3, %v1636_v54 }
 0x126   : > { %v1831_v48 = vld [vmem:[#allocation2 + $0x170] sm:$0xff]  ;;  %1670 = vst.msk [vmem:[#allocation2 + $0x80] sm:$0xff] %vm276_vm3, %v1541_v57 }
 0x127   : > { %v1963_v49 = vadd.f32 %v4236_v21, %v1831_v48  ;;  %v1863_v43 = vld [vmem:[#allocation2 + $0x270] sm:$0xff]  ;;  %1702 = vst.msk [vmem:[#allocation2 + $0x180] sm:$0xff] %vm276_vm3, %v1573_v62 }
 0x128   : > { %v1995_v50 = vadd.f32 %v4236_v21, %v1863_v43  ;;  %v1895_v59 = vld [vmem:[#allocation2 + $0x370] sm:$0xff]  ;;  %1734 = vst.msk [vmem:[#allocation2 + $0x280] sm:$0xff] %vm276_vm3, %v1605_v39  ;;  %v518_v43 = vld [vmem:[#allocation2 + $0x388] sm:$0xff] }
 0x129   : > { %v2091_v61 = vmax.f32 %v1963_v49, 0.0  ;;  %v2027_v17 = vadd.f32 %v4236_v21, %v1895_v59  ;;  %v1800_v63 = vld [vmem:[#allocation2 + $0x78] sm:$0xff]  ;;  %1766 = vst.msk [vmem:[#allocation2 + $0x380] sm:$0xff] %vm276_vm3, %v1637_v10 }
 0x12a   : > { %v1407_v19 = vpop.f32.mrf.mxu2  ;;  %v4352_v20 = vpop.f32.mrf.mxu3  ;;  %v2123_v58 = vmax.f32 %v1995_v50, 0.0  ;;  %v1932_v45 = vadd.f32 %v4236_v21, %v1800_v63  ;;  %v1832_v9 = vld [vmem:[#allocation2 + $0x178] sm:$0xff]  ;;  %1671 = vst.msk [vmem:[#allocation2 + $0x88] sm:$0xff] %vm276_vm3, %v1542_v33 }
 0x12b   : > { %v4360_v23 = vpop.f32.mrf.mxu0  ;;  %v4362_v35 = vpop.f32.mrf.mxu1  ;;  %v1606_v56 = vadd.f32 %v1407_v19, %v486_v46  ;;  %v2219_v40 = vpack.c.bf16 %v2091_v61, %v2091_v61  ;;  %v2155_v1 = vmax.f32 %v2027_v17, 0.0  ;;  %v1964_v7 = vadd.f32 %v4236_v21, %v1832_v9  ;;  %v1864_v13 = vld [vmem:[#allocation2 + $0x278] sm:$0xff]  ;;  %1703 = vst.msk [vmem:[#allocation2 + $0x188] sm:$0xff] %vm276_vm3, %v1574_v38  ;;  %v423_v61 = vld [vmem:[#allocation2 + $0x90] sm:$0xff] }
 0x12c   : > { %v2251_v2 = vpack.c.bf16 %v2123_v58, %v2123_v58  ;;  %v2060_v3 = vmax.f32 %v1932_v45, 0.0  ;;  %v1996_v27 = vadd.f32 %v4236_v21, %v1864_v13  ;;  %v1896_v60 = vld [vmem:[#allocation2 + $0x378] sm:$0xff]  ;;  %v455_v58 = vld [vmem:[#allocation2 + $0x190] sm:$0xff]  ;;  %v1638_v9 = vadd.f32 %v4352_v20, %v518_v43 }
 0x12d   : > { %1735 = vst.msk [vmem:[#allocation2 + $0x288] sm:$0xff] %vm276_vm3, %v1606_v56  ;;  %v2283_v8 = vpack.c.bf16 %v2155_v1, %v2155_v1  ;;  %v2092_v32 = vmax.f32 %v1964_v7, 0.0  ;;  %v2028_v28 = vadd.f32 %v4236_v21, %v1896_v60  ;;  %v1801_v12 = vld [vmem:[#allocation2 + $0x80] sm:$0xff]  ;;  %v1543_v7 = vadd.f32 %v4360_v23, %v423_v61  ;;  %v519_v13 = vld [vmem:[#allocation2 + $0x390] sm:$0xff]  ;;  %v456_v60 = vld [vmem:[#allocation2 + $0x198] sm:$0xff] }
 0x12e   : > { %2348 = vst.msk [vmem:[%s3734_s12 + $0xb8] sm:$0xf] %vm2301_vm4, %v2219_v40  ;;  %v2188_v14 = vpack.c.bf16 %v2060_v3, %v2060_v3  ;;  %v2124_v19 = vmax.f32 %v1996_v27, 0.0  ;;  %v1933_v15 = vadd.f32 %v4236_v21, %v1801_v12  ;;  %v1833_v44 = vld [vmem:[#allocation2 + $0x180] sm:$0xff]  ;;  %v487_v40 = vld [vmem:[#allocation2 + $0x290] sm:$0xff]  ;;  %v424_v3 = vld [vmem:[#allocation2 + $0x98] sm:$0xff] }
 0x12f   : > { %2380 = vst.msk [vmem:[%s3734_s12 + $0x138] sm:$0xf] %vm2301_vm4, %v2251_v2  ;;  %v2220_v31 = vpack.c.bf16 %v2092_v32, %v2092_v32  ;;  %v2156_v30 = vmax.f32 %v2028_v28, 0.0  ;;  %v1965_v22 = vadd.f32 %v4236_v21, %v1833_v44  ;;  %v1865_v4 = vld [vmem:[#allocation2 + $0x280] sm:$0xff]  ;;  %v1575_v2 = vadd.f32 %v4362_v35, %v455_v58  ;;  %v488_v23 = vld [vmem:[#allocation2 + $0x298] sm:$0xff] }
 0x130   : > { %2412 = vst.msk [vmem:[%s3734_s12 + $0x1b8] sm:$0xf] %vm2301_vm4, %v2283_v8  ;;  %v2252_v24 = vpack.c.bf16 %v2124_v19, %v2124_v19  ;;  %v2061_v36 = vmax.f32 %v1933_v15, 0.0  ;;  %v1997_v5 = vadd.f32 %v4236_v21, %v1865_v4  ;;  %v1897_v16 = vld [vmem:[#allocation2 + $0x380] sm:$0xff]  ;;  %v520_v35 = vld [vmem:[#allocation2 + $0x398] sm:$0xff] }
 0x131   : > { %2317 = vst.msk [vmem:[%s3734_s12 + $0x3c] sm:$0xf] %vm2301_vm4, %v2188_v14  ;;  %v2284_v25 = vpack.c.bf16 %v2156_v30, %v2156_v30  ;;  %v2093_v51 = vmax.f32 %v1965_v22, 0.0  ;;  %v2029_v52 = vadd.f32 %v4236_v21, %v1897_v16  ;;  %v1802_v18 = vld [vmem:[#allocation2 + $0x88] sm:$0xff]  ;;  %v425_v19 = vld [vmem:[#allocation2 + $0xa0] sm:$0xff] }
 0x132   : > { %v4378_v34 = vpop.f32.mrf.mxu2  ;;  %v4380_v37 = vpop.f32.mrf.mxu3  ;;  %2349 = vst.msk [vmem:[%s3734_s12 + $0xbc] sm:$0xf] %vm2301_vm4, %v2220_v31  ;;  %v2189_v54 = vpack.c.bf16 %v2061_v36, %v2061_v36  ;;  %v2125_v26 = vmax.f32 %v1997_v5, 0.0  ;;  %v1934_v57 = vadd.f32 %v4236_v21, %v1802_v18  ;;  %v1834_v53 = vld [vmem:[#allocation2 + $0x188] sm:$0xff]  ;;  %v521_v30 = vld [vmem:[#allocation2 + $0x3a0] sm:$0xff] }
 0x133   : > { %v4386_v41 = vpop.f32.mrf.mxu0  ;;  %v4388_v42 = vpop.f32.mrf.mxu1  ;;  %2381 = vst.msk [vmem:[%s3734_s12 + $0x13c] sm:$0xf] %vm2301_vm4, %v2252_v24  ;;  %v2221_v39 = vpack.c.bf16 %v2093_v51, %v2093_v51  ;;  %v2157_v6 = vmax.f32 %v2029_v52, 0.0  ;;  %v1966_v10 = vadd.f32 %v4236_v21, %v1834_v53  ;;  %v1607_v27 = vadd.f32 %v4378_v34, %v487_v40  ;;  %v426_v22 = vld [vmem:[#allocation2 + $0xa8] sm:$0xff] }
 0x134   : > { %2413 = vst.msk [vmem:[%s3734_s12 + $0x1bc] sm:$0xf] %vm2301_vm4, %v2284_v25  ;;  %v1866_v46 = vld [vmem:[#allocation2 + $0x288] sm:$0xff]  ;;  %v2253_v48 = vpack.c.bf16 %v2125_v26, %v2125_v26  ;;  %v2062_v33 = vmax.f32 %v1934_v57, 0.0  ;;  %v1639_v32 = vadd.f32 %v4380_v37, %v519_v13  ;;  %v1544_v28 = vadd.f32 %v4386_v41, %v424_v3  ;;  %v457_v37 = vld [vmem:[#allocation2 + $0x1a0] sm:$0xff] }
 0x135   : > { %2318 = vst.msk [vmem:[%s3734_s12 + $0x40] sm:$0xf] %vm2301_vm4, %v2189_v54  ;;  %v1998_v49 = vadd.f32 %v4236_v21, %v1866_v46  ;;  %v2285_v59 = vpack.c.bf16 %v2157_v6, %v2157_v6  ;;  %v2094_v56 = vmax.f32 %v1966_v10, 0.0  ;;  %v1576_v34 = vadd.f32 %v4388_v42, %v456_v60  ;;  %v489_v41 = vld [vmem:[#allocation2 + $0x2a0] sm:$0xff] }
 0x136   : > { %2350 = vst.msk [vmem:[%s3734_s12 + $0xc0] sm:$0xf] %vm2301_vm4, %v2221_v39  ;;  %v2190_v17 = vpack.c.bf16 %v2062_v33, %v2062_v33 }
 0x137   : > { %2382 = vst.msk [vmem:[%s3734_s12 + $0x140] sm:$0xf] %vm2301_vm4, %v2253_v48  ;;  %v2126_v63 = vmax.f32 %v1998_v49, 0.0  ;;  %v2222_v45 = vpack.c.bf16 %v2094_v56, %v2094_v56 }
 0x138   : > { %2414 = vst.msk [vmem:[%s3734_s12 + $0x1c0] sm:$0xf] %vm2301_vm4, %v2285_v59 }
 0x139   : > { %2319 = vst.msk [vmem:[%s3734_s12 + $0x44] sm:$0xf] %vm2301_vm4, %v2190_v17  ;;  %v2254_v1 = vpack.c.bf16 %v2126_v63, %v2126_v63 }
 0x13a   : > { %v4403_v55 = vpop.f32.mrf.mxu2  ;;  %v4405_v0 = vpop.f32.mrf.mxu3  ;;  %2351 = vst.msk [vmem:[%s3734_s12 + $0xc4] sm:$0xf] %vm2301_vm4, %v2222_v45 }
 0x13b   : > { %v4411_v29 = vpop.f32.mrf.mxu0  ;;  %v4413_v47 = vpop.f32.mrf.mxu1  ;;  %2383 = vst.msk [vmem:[%s3734_s12 + $0x144] sm:$0xf] %vm2301_vm4, %v2254_v1  ;;  %v1608_v15 = vadd.f32 %v4403_v55, %v488_v23  ;;  %v1640_v44 = vadd.f32 %v4405_v0, %v520_v35 }
 0x13c   : > { %1767 = vst.msk [vmem:[#allocation2 + $0x388] sm:$0xff] %vm276_vm3, %v1638_v9  ;;  %v1545_v31 = vadd.f32 %v4411_v29, %v425_v19  ;;  %v1577_v42 = vadd.f32 %v4413_v47, %v457_v37 }
 0x13d   : > { %1672 = vst.msk [vmem:[#allocation2 + $0x90] sm:$0xff] %vm276_vm3, %v1543_v7 }
 0x13e   : > { %1704 = vst.msk [vmem:[#allocation2 + $0x190] sm:$0xff] %vm276_vm3, %v1575_v2 }
 0x13f   : > { %1736 = vst.msk [vmem:[#allocation2 + $0x290] sm:$0xff] %vm276_vm3, %v1607_v27 }
 0x140   : > { %1768 = vst.msk [vmem:[#allocation2 + $0x390] sm:$0xff] %vm276_vm3, %v1639_v32 }
 0x141   : > { %1673 = vst.msk [vmem:[#allocation2 + $0x98] sm:$0xff] %vm276_vm3, %v1544_v28 }
 0x142   : > { %v4433_v62 = vpop.f32.mrf.mxu2  ;;  %v4435_v11 = vpop.f32.mrf.mxu3  ;;  %1705 = vst.msk [vmem:[#allocation2 + $0x198] sm:$0xff] %vm276_vm3, %v1576_v34 }
 0x143   : > { %v1257_v38 = vpop.f32.mrf.mxu0  ;;  %v4443_v50 = vpop.f32.mrf.mxu1  ;;  %v1898_v4 = vld [vmem:[#allocation2 + $0x388] sm:$0xff]  ;;  %1737 = vst.msk [vmem:[#allocation2 + $0x298] sm:$0xff] %vm276_vm3, %v1608_v15  ;;  %v1609_v55 = vadd.f32 %v4433_v62, %v489_v41  ;;  %v1641_v29 = vadd.f32 %v4435_v11, %v521_v30 }
 0x144   : > { %v2030_v0 = vadd.f32 %v4236_v21, %v1898_v4  ;;  %v1803_v5 = vld [vmem:[#allocation2 + $0x90] sm:$0xff]  ;;  %1769 = vst.msk [vmem:[#allocation2 + $0x398] sm:$0xff] %vm276_vm3, %v1640_v44  ;;  %v1546_v25 = vadd.f32 %v1257_v38, %v426_v22 }
 0x145   : > { %v1935_v16 = vadd.f32 %v4236_v21, %v1803_v5  ;;  %v1835_v47 = vld [vmem:[#allocation2 + $0x190] sm:$0xff]  ;;  %1674 = vst.msk [vmem:[#allocation2 + $0xa0] sm:$0xff] %vm276_vm3, %v1545_v31  ;;  %v458_v5 = vld [vmem:[#allocation2 + $0x1a8] sm:$0xff] }
 0x146   : > { %v2158_v18 = vmax.f32 %v2030_v0, 0.0  ;;  %v1967_v54 = vadd.f32 %v4236_v21, %v1835_v47  ;;  %v1867_v26 = vld [vmem:[#allocation2 + $0x290] sm:$0xff]  ;;  %1706 = vst.msk [vmem:[#allocation2 + $0x1a0] sm:$0xff] %vm276_vm3, %v1577_v42  ;;  %v490_v47 = vld [vmem:[#allocation2 + $0x2a8] sm:$0xff] }
 0x147   : > { %v2063_v57 = vmax.f32 %v1935_v16, 0.0  ;;  %v1999_v53 = vadd.f32 %v4236_v21, %v1867_v26  ;;  %v1899_v62 = vld [vmem:[#allocation2 + $0x390] sm:$0xff]  ;;  %1738 = vst.msk [vmem:[#allocation2 + $0x2a0] sm:$0xff] %vm276_vm3, %v1609_v55 }
 0x148   : > { %v2286_v11 = vpack.c.bf16 %v2158_v18, %v2158_v18  ;;  %v2095_v39 = vmax.f32 %v1967_v54, 0.0  ;;  %v2031_v6 = vadd.f32 %v4236_v21, %v1899_v62  ;;  %v1804_v10 = vld [vmem:[#allocation2 + $0x98] sm:$0xff]  ;;  %1770 = vst.msk [vmem:[#allocation2 + $0x3a0] sm:$0xff] %vm276_vm3, %v1641_v29  ;;  %v522_v54 = vld [vmem:[#allocation2 + $0x3a8] sm:$0xff] }
 0x149   : > { %v2191_v46 = vpack.c.bf16 %v2063_v57, %v2063_v57  ;;  %v2127_v48 = vmax.f32 %v1999_v53, 0.0  ;;  %v1936_v33 = vadd.f32 %v4236_v21, %v1804_v10  ;;  %v1836_v49 = vld [vmem:[#allocation2 + $0x198] sm:$0xff]  ;;  %1675 = vst.msk [vmem:[#allocation2 + $0xa8] sm:$0xff] %vm276_vm3, %v1546_v25  ;;  %v1578_v57 = vadd.f32 %v4443_v50, %v458_v5  ;;  %v427_v53 = vld [vmem:[#allocation2 + $0xb0] sm:$0xff] }
 0x14a   : > { %v4461_v8 = vpop.f32.mrf.mxu2  ;;  %v4463_v20 = vpop.f32.mrf.mxu3  ;;  %2415 = vst.msk [vmem:[%s3734_s12 + $0x1c4] sm:$0xf] %vm2301_vm4, %v2286_v11  ;;  %v2223_v43 = vpack.c.bf16 %v2095_v39, %v2095_v39  ;;  %v2159_v38 = vmax.f32 %v2031_v6, 0.0  ;;  %v1968_v59 = vadd.f32 %v4236_v21, %v1836_v49  ;;  %v1868_v56 = vld [vmem:[#allocation2 + $0x298] sm:$0xff]  ;;  %v459_v6 = vld [vmem:[#allocation2 + $0x1b0] sm:$0xff] }
 0x14b   : > { %v4469_v12 = vpop.f32.mrf.mxu0  ;;  %v4471_v14 = vpop.f32.mrf.mxu1  ;;  %2320 = vst.msk [vmem:[%s3734_s12 + $0x48] sm:$0xf] %vm2301_vm4, %v2191_v46  ;;  %v2255_v61 = vpack.c.bf16 %v2127_v48, %v2127_v48  ;;  %v2064_v17 = vmax.f32 %v1936_v33, 0.0  ;;  %v2000_v63 = vadd.f32 %v4236_v21, %v1868_v56  ;;  %v1900_v58 = vld [vmem:[#allocation2 + $0x398] sm:$0xff]  ;;  %v1610_v39 = vadd.f32 %v4461_v8, %v490_v47  ;;  %v491_v46 = vld [vmem:[#allocation2 + $0x2b0] sm:$0xff] }
 0x14c   : > { %2352 = vst.msk [vmem:[%s3734_s12 + $0xc8] sm:$0xf] %vm2301_vm4, %v2223_v43  ;;  %v2287_v9 = vpack.c.bf16 %v2159_v38, %v2159_v38  ;;  %v2096_v40 = vmax.f32 %v1968_v59, 0.0  ;;  %v2032_v1 = vadd.f32 %v4236_v21, %v1900_v58  ;;  %v1805_v7 = vld [vmem:[#allocation2 + $0xa0] sm:$0xff]  ;;  %v1642_v10 = vadd.f32 %v4463_v20, %v522_v54  ;;  %v523_v33 = vld [vmem:[#allocation2 + $0x3b0] sm:$0xff]  ;;  %v428_v43 = vld [vmem:[#allocation2 + $0xb8] sm:$0xff] }
 0x14d   : > { %2384 = vst.msk [vmem:[%s3734_s12 + $0x148] sm:$0xf] %vm2301_vm4, %v2255_v61  ;;  %v2192_v13 = vpack.c.bf16 %v2064_v17, %v2064_v17  ;;  %v2128_v2 = vmax.f32 %v2000_v63, 0.0  ;;  %v1937_v3 = vadd.f32 %v4236_v21, %v1805_v7  ;;  %v1837_v27 = vld [vmem:[#allocation2 + $0x1a0] sm:$0xff]  ;;  %v1547_v48 = vadd.f32 %v4469_v12, %v427_v53  ;;  %v460_v20 = vld [vmem:[#allocation2 + $0x1b8] sm:$0xff] }
 0x14e   : > { %2416 = vst.msk [vmem:[%s3734_s12 + $0x1c8] sm:$0xf] %vm2301_vm4, %v2287_v9  ;;  %v2224_v32 = vpack.c.bf16 %v2096_v40, %v2096_v40  ;;  %v2160_v23 = vmax.f32 %v2032_v1, 0.0  ;;  %v1969_v28 = vadd.f32 %v4236_v21, %v1837_v27  ;;  %v1869_v35 = vld [vmem:[#allocation2 + $0x2a0] sm:$0xff]  ;;  %v1579_v50 = vadd.f32 %v4471_v14, %v459_v6  ;;  %v492_v56 = vld [vmem:[#allocation2 + $0x2b8] sm:$0xff] }
 0x14f   : > { %2321 = vst.msk [vmem:[%s3734_s12 + $0x4c] sm:$0xf] %vm2301_vm4, %v2192_v13  ;;  %v2256_v19 = vpack.c.bf16 %v2128_v2, %v2128_v2  ;;  %v2065_v15 = vmax.f32 %v1937_v3, 0.0  ;;  %v2001_v37 = vadd.f32 %v4236_v21, %v1869_v35  ;;  %v1901_v44 = vld [vmem:[#allocation2 + $0x3a0] sm:$0xff]  ;;  %v524_v14 = vld [vmem:[#allocation2 + $0x3b8] sm:$0xff] }
 0x150   : > { %2353 = vst.msk [vmem:[%s3734_s12 + $0xcc] sm:$0xf] %vm2301_vm4, %v2224_v32  ;;  %v2288_v31 = vpack.c.bf16 %v2160_v23, %v2160_v23  ;;  %v2097_v30 = vmax.f32 %v1969_v28, 0.0  ;;  %v2033_v42 = vadd.f32 %v4236_v21, %v1901_v44  ;;  %v1806_v22 = vld [vmem:[#allocation2 + $0xa8] sm:$0xff]  ;;  %v429_v63 = vld [vmem:[#allocation2 + $0xc0] sm:$0xff] }
 0x151   : > { %2385 = vst.msk [vmem:[%s3734_s12 + $0x14c] sm:$0xf] %vm2301_vm4, %v2256_v19  ;;  %v2193_v4 = vpack.c.bf16 %v2065_v15, %v2065_v15  ;;  %v2129_v55 = vmax.f32 %v2001_v37, 0.0  ;;  %v1938_v0 = vadd.f32 %v4236_v21, %v1806_v22  ;;  %v461_v9 = vld [vmem:[#allocation2 + $0x1c0] sm:$0xff] }
 0x152   : > { %v4485_v24 = vpop.f32.mrf.mxu2  ;;  %v4487_v36 = vpop.f32.mrf.mxu3  ;;  %2417 = vst.msk [vmem:[%s3734_s12 + $0x1cc] sm:$0xf] %vm2301_vm4, %v2288_v31  ;;  %v2225_v29 = vpack.c.bf16 %v2097_v30, %v2097_v30  ;;  %v2161_v16 = vmax.f32 %v2033_v42, 0.0  ;;  %v493_v40 = vld [vmem:[#allocation2 + $0x2c0] sm:$0xff] }
 0x153   : > { %v4494_v51 = vpop.f32.mrf.mxu0  ;;  %v4496_v52 = vpop.f32.mrf.mxu1  ;;  %2322 = vst.msk [vmem:[%s3734_s12 + $0x50] sm:$0xf] %vm2301_vm4, %v2193_v4  ;;  %v2257_v25 = vpack.c.bf16 %v2129_v55, %v2129_v55  ;;  %v2066_v18 = vmax.f32 %v1938_v0, 0.0  ;;  %v1611_v8 = vadd.f32 %v4485_v24, %v491_v46  ;;  %v1643_v12 = vadd.f32 %v4487_v36, %v523_v33 }
 0x154   : > { %2354 = vst.msk [vmem:[%s3734_s12 + $0xd0] sm:$0xf] %vm2301_vm4, %v2225_v29  ;;  %v2289_v26 = vpack.c.bf16 %v2161_v16, %v2161_v16  ;;  %v1548_v61 = vadd.f32 %v4494_v51, %v428_v43  ;;  %v1580_v17 = vadd.f32 %v4496_v52, %v460_v20 }
 0x155   : > { %2386 = vst.msk [vmem:[%s3734_s12 + $0x150] sm:$0xf] %vm2301_vm4, %v2257_v25  ;;  %v2194_v11 = vpack.c.bf16 %v2066_v18, %v2066_v18 }
 0x156   : > { %2418 = vst.msk [vmem:[%s3734_s12 + $0x1d0] sm:$0xf] %vm2301_vm4, %v2289_v26 }
 0x157   : > { %2323 = vst.msk [vmem:[%s3734_s12 + $0x54] sm:$0xf] %vm2301_vm4, %v2194_v11 }
 0x158   : > { %1707 = vst.msk [vmem:[#allocation2 + $0x1a8] sm:$0xff] %vm276_vm3, %v1578_v57 }
 0x159   : > { %1739 = vst.msk [vmem:[#allocation2 + $0x2a8] sm:$0xff] %vm276_vm3, %v1610_v39 }
 0x15a   : > { %v4512_v45 = vpop.f32.mrf.mxu2  ;;  %v4520_v60 = vpop.f32.mrf.mxu3  ;;  %1771 = vst.msk [vmem:[#allocation2 + $0x3a8] sm:$0xff] %vm276_vm3, %v1642_v10 }
 0x15b   : > { %v4525_v34 = vpop.f32.mrf.mxu0  ;;  %v4530_v41 = vpop.f32.mrf.mxu1  ;;  %1676 = vst.msk [vmem:[#allocation2 + $0xb0] sm:$0xff] %vm276_vm3, %v1547_v48  ;;  %v1612_v24 = vadd.f32 %v4512_v45, %v492_v56  ;;  %v1644_v36 = vadd.f32 %v4520_v60, %v524_v14 }
 0x15c   : > { %1708 = vst.msk [vmem:[#allocation2 + $0x1b0] sm:$0xff] %vm276_vm3, %v1579_v50  ;;  %v1549_v51 = vadd.f32 %v4525_v34, %v429_v63  ;;  %v1581_v13 = vadd.f32 %v4530_v41, %v461_v9 }
 0x15d   : > { %1740 = vst.msk [vmem:[#allocation2 + $0x2b0] sm:$0xff] %vm276_vm3, %v1611_v8 }
 0x15e   : > { %1772 = vst.msk [vmem:[#allocation2 + $0x3b0] sm:$0xff] %vm276_vm3, %v1643_v12 }
 0x15f   : > { %v1838_v1 = vld [vmem:[#allocation2 + $0x1a8] sm:$0xff]  ;;  %1677 = vst.msk [vmem:[#allocation2 + $0xb8] sm:$0xff] %vm276_vm3, %v1548_v61 }
 0x160   : > { %v1970_v52 = vadd.f32 %v4236_v21, %v1838_v1  ;;  %v1870_v7 = vld [vmem:[#allocation2 + $0x2a8] sm:$0xff]  ;;  %1709 = vst.msk [vmem:[#allocation2 + $0x1b8] sm:$0xff] %vm276_vm3, %v1580_v17 }
 0x161   : > { %v2002_v45 = vadd.f32 %v4236_v21, %v1870_v7  ;;  %v1902_v2 = vld [vmem:[#allocation2 + $0x3a8] sm:$0xff]  ;;  %1741 = vst.msk [vmem:[#allocation2 + $0x2b8] sm:$0xff] %vm276_vm3, %v1612_v24 }
 0x162   : > { %v1425_v62 = vpop.f32.mrf.mxu2  ;;  %v4554_v49 = vpop.f32.mrf.mxu3  ;;  %v2098_v60 = vmax.f32 %v1970_v52, 0.0  ;;  %v2034_v32 = vadd.f32 %v4236_v21, %v1902_v2  ;;  %v1807_v23 = vld [vmem:[#allocation2 + $0xb0] sm:$0xff]  ;;  %1773 = vst.msk [vmem:[#allocation2 + $0x3b8] sm:$0xff] %vm276_vm3, %v1644_v36 }
 0x163   : > { %v4558_v38 = vpop.f32.mrf.mxu0  ;;  %v4562_v59 = vpop.f32.mrf.mxu1  ;;  %v1613_v3 = vadd.f32 %v1425_v62, %v493_v40  ;;  %v2130_v35 = vmax.f32 %v2002_v45, 0.0  ;;  %v1939_v34 = vadd.f32 %v4236_v21, %v1807_v23  ;;  %v1839_v19 = vld [vmem:[#allocation2 + $0x1b0] sm:$0xff]  ;;  %1678 = vst.msk [vmem:[#allocation2 + $0xc0] sm:$0xff] %vm276_vm3, %v1549_v51  ;;  %v4625_v40 = vld [vmem:[%s4931_s2] ss:$0 sm:$0xff] }
 0x164   : > { %v2226_v37 = vpack.c.bf16 %v2098_v60, %v2098_v60  ;;  %v2162_v44 = vmax.f32 %v2034_v32, 0.0  ;;  %v1971_v41 = vadd.f32 %v4236_v21, %v1839_v19  ;;  %v1871_v31 = vld [vmem:[#allocation2 + $0x2b0] sm:$0xff]  ;;  %1710 = vst.msk [vmem:[#allocation2 + $0x1c0] sm:$0xff] %vm276_vm3, %v1581_v13  ;;  %v525_v51 = vld [vmem:[#allocation2 + $0x3c0] sm:$0xff]  ;;  %v430_v13 = vld [vmem:[#allocation2 + $0xc8] sm:$0xff] }
 0x165   : > { %v2258_v42 = vpack.c.bf16 %v2130_v35, %v2130_v35  ;;  %v2067_v22 = vmax.f32 %v1939_v34, 0.0  ;;  %v2003_v4 = vadd.f32 %v4236_v21, %v1871_v31  ;;  %v1903_v55 = vld [vmem:[#allocation2 + $0x3b0] sm:$0xff]  ;;  %1742 = vst.msk [vmem:[#allocation2 + $0x2c0] sm:$0xff] %vm276_vm3, %v1613_v3  ;;  %v462_v60 = vld [vmem:[#allocation2 + $0x1c8] sm:$0xff]  ;;  %v1645_v23 = vadd.f32 %v4554_v49, %v525_v51 }
 0x166   : > { %2355 = vst.msk [vmem:[%s3734_s12 + $0xd4] sm:$0xf] %vm2301_vm4, %v2226_v37  ;;  %v2290_v0 = vpack.c.bf16 %v2162_v44, %v2162_v44  ;;  %v2099_v5 = vmax.f32 %v1971_v41, 0.0  ;;  %v2035_v29 = vadd.f32 %v4236_v21, %v1903_v55  ;;  %v1808_v16 = vld [vmem:[#allocation2 + $0xb8] sm:$0xff]  ;;  %v494_v35 = vld [vmem:[#allocation2 + $0x2c8] sm:$0xff]  ;;  %v1550_v19 = vadd.f32 %v4558_v38, %v430_v13  ;;  %v431_v41 = vld [vmem:[#allocation2 + $0xd0] sm:$0xff] }
 0x167   : > { %2387 = vst.msk [vmem:[%s3734_s12 + $0x154] sm:$0xf] %vm2301_vm4, %v2258_v42  ;;  %v2195_v47 = vpack.c.bf16 %v2067_v22, %v2067_v22  ;;  %v2131_v25 = vmax.f32 %v2003_v4, 0.0  ;;  %v1940_v18 = vadd.f32 %v4236_v21, %v1808_v16  ;;  %v1840_v54 = vld [vmem:[#allocation2 + $0x1b8] sm:$0xff]  ;;  %v526_v37 = vld [vmem:[#allocation2 + $0x3c8] sm:$0xff]  ;;  %v1582_v44 = vadd.f32 %v4562_v59, %v462_v60  ;;  %v463_v42 = vld [vmem:[#allocation2 + $0x1d0] sm:$0xff] }
 0x168   : > { %2419 = vst.msk [vmem:[%s3734_s12 + $0x1d4] sm:$0xf] %vm2301_vm4, %v2290_v0  ;;  %v2227_v26 = vpack.c.bf16 %v2099_v5, %v2099_v5  ;;  %v2163_v57 = vmax.f32 %v2035_v29, 0.0  ;;  %v1972_v53 = vadd.f32 %v4236_v21, %v1840_v54  ;;  %v1872_v62 = vld [vmem:[#allocation2 + $0x2b8] sm:$0xff]  ;;  %v495_v22 = vld [vmem:[#allocation2 + $0x2d0] sm:$0xff]  ;;  %v433_v54 = vld [vmem:[#allocation2 + $0xe0] sm:$0xff] }
 0x169   : > { %2324 = vst.msk [vmem:[%s3734_s12 + $0x58] sm:$0xf] %vm2301_vm4, %v2195_v47  ;;  %v2259_v11 = vpack.c.bf16 %v2131_v25, %v2131_v25  ;;  %v2068_v39 = vmax.f32 %v1940_v18, 0.0  ;;  %v2004_v6 = vadd.f32 %v4236_v21, %v1872_v62  ;;  %v1904_v10 = vld [vmem:[#allocation2 + $0x3b8] sm:$0xff]  ;;  %v527_v4 = vld [vmem:[#allocation2 + $0x3d0] sm:$0xff] }
 0x16a   : > { %v4570_v58 = vpop.f32.mrf.mxu2  ;;  %v4583_v27 = vpop.f32.mrf.mxu3  ;;  %2356 = vst.msk [vmem:[%s3734_s12 + $0xd8] sm:$0xf] %vm2301_vm4, %v2227_v26  ;;  %v2291_v46 = vpack.c.bf16 %v2163_v57, %v2163_v57  ;;  %v2100_v48 = vmax.f32 %v1972_v53, 0.0  ;;  %v2036_v33 = vadd.f32 %v4236_v21, %v1904_v10  ;;  %v1809_v50 = vld [vmem:[#allocation2 + $0xc0] sm:$0xff]  ;;  %v432_v0 = vld [vmem:[#allocation2 + $0xd8] sm:$0xff] }
 0x16b   : > { %v4587_v28 = vpop.f32.mrf.mxu0  ;;  %v4591_v15 = vpop.f32.mrf.mxu1  ;;  %2388 = vst.msk [vmem:[%s3734_s12 + $0x158] sm:$0xf] %vm2301_vm4, %v2259_v11  ;;  %v2196_v43 = vpack.c.bf16 %v2068_v39, %v2068_v39  ;;  %v2132_v8 = vmax.f32 %v2004_v6, 0.0  ;;  %v1941_v20 = vadd.f32 %v4236_v21, %v1809_v50  ;;  %v1841_v12 = vld [vmem:[#allocation2 + $0x1c0] sm:$0xff]  ;;  %v1614_v31 = vadd.f32 %v4570_v58, %v494_v35  ;;  %v464_v29 = vld [vmem:[#allocation2 + $0x1d8] sm:$0xff] }
 0x16c   : > { %2420 = vst.msk [vmem:[%s3734_s12 + $0x1d8] sm:$0xf] %vm2301_vm4, %v2291_v46  ;;  %v2228_v61 = vpack.c.bf16 %v2100_v48, %v2100_v48  ;;  %v2164_v14 = vmax.f32 %v2036_v33, 0.0  ;;  %v1973_v17 = vadd.f32 %v4236_v21, %v1841_v12  ;;  %v1873_v63 = vld [vmem:[#allocation2 + $0x2c0] sm:$0xff]  ;;  %v1646_v49 = vadd.f32 %v4583_v27, %v526_v37  ;;  %v496_v47 = vld [vmem:[#allocation2 + $0x2d8] sm:$0xff] }
 0x16d   : > { %2325 = vst.msk [vmem:[%s3734_s12 + $0x5c] sm:$0xf] %vm2301_vm4, %v2196_v43  ;;  %v2260_v9 = vpack.c.bf16 %v2132_v8, %v2132_v8  ;;  %v2069_v36 = vmax.f32 %v1941_v20, 0.0  ;;  %v2005_v1 = vadd.f32 %v4625_v40, %v1873_v63  ;;  %v1551_v38 = vadd.f32 %v4587_v28, %v431_v41  ;;  %v528_v18 = vld [vmem:[#allocation2 + $0x3d8] sm:$0xff] }
 0x16e   : > { %2357 = vst.msk [vmem:[%s3734_s12 + $0xdc] sm:$0xf] %vm2301_vm4, %v2228_v61  ;;  %v2292_v21 = vpack.c.bf16 %v2164_v14, %v2164_v14  ;;  %v2101_v7 = vmax.f32 %v1973_v17, 0.0  ;;  %v1583_v59 = vadd.f32 %v4591_v15, %v463_v42 }
 0x16f   : > { %2389 = vst.msk [vmem:[%s3734_s12 + $0x15c] sm:$0xf] %vm2301_vm4, %v2260_v9  ;;  %v2197_v2 = vpack.c.bf16 %v2069_v36, %v2069_v36  ;;  %v2133_v3 = vmax.f32 %v2005_v1, 0.0 }
 0x170   : > { %2421 = vst.msk [vmem:[%s3734_s12 + $0x1dc] sm:$0xf] %vm2301_vm4, %v2292_v21  ;;  %v2229_v32 = vpack.c.bf16 %v2101_v7, %v2101_v7 }
 0x171   : > { %2326 = vst.msk [vmem:[%s3734_s12 + $0x60] sm:$0xf] %vm2301_vm4, %v2197_v2  ;;  %v2261_v34 = vpack.c.bf16 %v2133_v3, %v2133_v3 }
 0x172   : > { %v4595_v30 = vpop.f32.mrf.mxu2  ;;  %v1510_v56 = vpop.f32.mrf.mxu3  ;;  %2358 = vst.msk [vmem:[%s3734_s12 + $0xe0] sm:$0xf] %vm2301_vm4, %v2229_v32 }
 0x173   : > { %v1272_v24 = vpop.f32.mrf.mxu0  ;;  %v1352_v52 = vpop.f32.mrf.mxu1  ;;  %2390 = vst.msk [vmem:[%s3734_s12 + $0x160] sm:$0xf] %vm2301_vm4, %v2261_v34  ;;  %v1615_v58 = vadd.f32 %v4595_v30, %v495_v22  ;;  %v1647_v27 = vadd.f32 %v1510_v56, %v527_v4 }
 0x174   : > { %1774 = vst.msk [vmem:[#allocation2 + $0x3c0] sm:$0xff] %vm276_vm3, %v1645_v23  ;;  %v1552_v25 = vadd.f32 %v1272_v24, %v432_v0  ;;  %v1584_v15 = vadd.f32 %v1352_v52, %v464_v29 }
 0x175   : > { %1679 = vst.msk [vmem:[#allocation2 + $0xc8] sm:$0xff] %vm276_vm3, %v1550_v19 }
 0x176   : > { %1711 = vst.msk [vmem:[#allocation2 + $0x1c8] sm:$0xff] %vm276_vm3, %v1582_v44 }
 0x177   : > { %1743 = vst.msk [vmem:[#allocation2 + $0x2c8] sm:$0xff] %vm276_vm3, %v1614_v31 }
 0x178   : > { %1775 = vst.msk [vmem:[#allocation2 + $0x3c8] sm:$0xff] %vm276_vm3, %v1646_v49 }
 0x179   : > { %1680 = vst.msk [vmem:[#allocation2 + $0xd0] sm:$0xff] %vm276_vm3, %v1551_v38 }
 0x17a   : > { %v1432_v45 = vpop.f32.mrf.mxu2  ;;  %v1512_v55 = vpop.f32.mrf.mxu3  ;;  %1712 = vst.msk [vmem:[#allocation2 + $0x1d0] sm:$0xff] %vm276_vm3, %v1583_v59 }
 0x17b   : > { %v1275_v5 = vpop.f32.mrf.mxu0  ;;  %v4652_v16 = vpop.f32.mrf.mxu1  ;;  %v1905_v26 = vld [vmem:[#allocation2 + $0x3c0] sm:$0xff]  ;;  %1744 = vst.msk [vmem:[#allocation2 + $0x2d0] sm:$0xff] %vm276_vm3, %v1615_v58  ;;  %v1616_v30 = vadd.f32 %v1432_v45, %v496_v47  ;;  %v1648_v62 = vadd.f32 %v1512_v55, %v528_v18 }
 0x17c   : > { %v2037_v57 = vadd.f32 %v4625_v40, %v1905_v26  ;;  %v1810_v53 = vld [vmem:[#allocation2 + $0xc8] sm:$0xff]  ;;  %1776 = vst.msk [vmem:[#allocation2 + $0x3d0] sm:$0xff] %vm276_vm3, %v1647_v27  ;;  %v1553_v6 = vadd.f32 %v1275_v5, %v433_v54  ;;  %v497_v26 = vld [vmem:[#allocation2 + $0x2e0] sm:$0xff] }
 0x17d   : > { %v1942_v11 = vadd.f32 %v4625_v40, %v1810_v53  ;;  %v1842_v39 = vld [vmem:[#allocation2 + $0x1c8] sm:$0xff]  ;;  %1681 = vst.msk [vmem:[#allocation2 + $0xd8] sm:$0xff] %vm276_vm3, %v1552_v25  ;;  %v465_v25 = vld [vmem:[#allocation2 + $0x1e0] sm:$0xff] }
 0x17e   : > { %v2165_v10 = vmax.f32 %v2037_v57, 0.0  ;;  %v1974_v46 = vadd.f32 %v4625_v40, %v1842_v39  ;;  %v1874_v48 = vld [vmem:[#allocation2 + $0x2c8] sm:$0xff]  ;;  %1713 = vst.msk [vmem:[#allocation2 + $0x1d8] sm:$0xff] %vm276_vm3, %v1584_v15 }
 0x17f   : > { %v2070_v33 = vmax.f32 %v1942_v11, 0.0  ;;  %v2006_v50 = vadd.f32 %v4625_v40, %v1874_v48  ;;  %v1906_v43 = vld [vmem:[#allocation2 + $0x3c8] sm:$0xff]  ;;  %1745 = vst.msk [vmem:[#allocation2 + $0x2d8] sm:$0xff] %vm276_vm3, %v1616_v30 }
 0x180   : > { %v2293_v20 = vpack.c.bf16 %v2165_v10, %v2165_v10  ;;  %v2102_v12 = vmax.f32 %v1974_v46, 0.0  ;;  %v2038_v56 = vadd.f32 %v4625_v40, %v1906_v43  ;;  %v1811_v61 = vld [vmem:[#allocation2 + $0xd0] sm:$0xff]  ;;  %1777 = vst.msk [vmem:[#allocation2 + $0x3d8] sm:$0xff] %vm276_vm3, %v1648_v62  ;;  %v529_v62 = vld [vmem:[#allocation2 + $0x3e0] sm:$0xff]  ;;  %v434_v10 = vld [vmem:[#allocation2 + $0xe8] sm:$0xff] }
 0x181   : > { %v2198_v17 = vpack.c.bf16 %v2070_v33, %v2070_v33  ;;  %v2134_v63 = vmax.f32 %v2006_v50, 0.0  ;;  %v1943_v24 = vadd.f32 %v4625_v40, %v1811_v61  ;;  %v1843_v9 = vld [vmem:[#allocation2 + $0x1d0] sm:$0xff]  ;;  %1682 = vst.msk [vmem:[#allocation2 + $0xe0] sm:$0xff] %vm276_vm3, %v1553_v6  ;;  %v1585_v6 = vadd.f32 %v4652_v16, %v465_v25  ;;  %v466_v50 = vld [vmem:[#allocation2 + $0x1e8] sm:$0xff] }
 0x182   : > { %v4655_v28 = vpop.f32.mrf.mxu2  ;;  %v4668_v8 = vpop.f32.mrf.mxu3  ;;  %2422 = vst.msk [vmem:[%s3734_s12 + $0x1e0] sm:$0xf] %vm2301_vm4, %v2293_v20  ;;  %v2230_v1 = vpack.c.bf16 %v2102_v12, %v2102_v12  ;;  %v2166_v51 = vmax.f32 %v2038_v56, 0.0  ;;  %v1975_v52 = vadd.f32 %v4625_v40, %v1843_v9  ;;  %v1875_v21 = vld [vmem:[#allocation2 + $0x2d0] sm:$0xff]  ;;  %v498_v20 = vld [vmem:[#allocation2 + $0x2e8] sm:$0xff] }
 0x183   : > { %v4672_v14 = vpop.f32.mrf.mxu0  ;;  %v4676_v36 = vpop.f32.mrf.mxu1  ;;  %2327 = vst.msk [vmem:[%s3734_s12 + $0x64] sm:$0xf] %vm2301_vm4, %v2198_v17  ;;  %v2262_v13 = vpack.c.bf16 %v2134_v63, %v2134_v63  ;;  %v2071_v45 = vmax.f32 %v1943_v24, 0.0  ;;  %v2007_v2 = vadd.f32 %v4625_v40, %v1875_v21  ;;  %v1907_v3 = vld [vmem:[#allocation2 + $0x3d0] sm:$0xff]  ;;  %v1617_v33 = vadd.f32 %v4655_v28, %v497_v26  ;;  %v530_v56 = vld [vmem:[#allocation2 + $0x3e8] sm:$0xff]  ;;  %v468_v21 = vld [vmem:[#allocation2 + $0x1f8] sm:$0xff] }
 0x184   : > { %2359 = vst.msk [vmem:[%s3734_s12 + $0xe4] sm:$0xf] %vm2301_vm4, %v2230_v1  ;;  %v2294_v60 = vpack.c.bf16 %v2166_v51, %v2166_v51  ;;  %v2103_v32 = vmax.f32 %v1975_v52, 0.0  ;;  %v2039_v23 = vadd.f32 %v4625_v40, %v1907_v3  ;;  %v1812_v35 = vld [vmem:[#allocation2 + $0xd8] sm:$0xff]  ;;  %v1649_v43 = vadd.f32 %v4668_v8, %v529_v62  ;;  %v435_v61 = vld [vmem:[#allocation2 + $0xf0] sm:$0xff] }
 0x185   : > { %2391 = vst.msk [vmem:[%s3734_s12 + $0x164] sm:$0xf] %vm2301_vm4, %v2262_v13  ;;  %v2199_v34 = vpack.c.bf16 %v2071_v45, %v2071_v45  ;;  %v2135_v19 = vmax.f32 %v2007_v2, 0.0  ;;  %v1944_v37 = vadd.f32 %v4625_v40, %v1812_v35  ;;  %v1844_v44 = vld [vmem:[#allocation2 + $0x1d8] sm:$0xff]  ;;  %v1554_v12 = vadd.f32 %v4672_v14, %v434_v10  ;;  %v467_v17 = vld [vmem:[#allocation2 + $0x1f0] sm:$0xff] }
 0x186   : > { %2423 = vst.msk [vmem:[%s3734_s12 + $0x1e4] sm:$0xf] %vm2301_vm4, %v2294_v60  ;;  %v2231_v41 = vpack.c.bf16 %v2103_v32, %v2103_v32  ;;  %v2167_v31 = vmax.f32 %v2039_v23, 0.0  ;;  %v1976_v42 = vadd.f32 %v4625_v40, %v1844_v44  ;;  %v1876_v49 = vld [vmem:[#allocation2 + $0x2d8] sm:$0xff]  ;;  %v1586_v16 = vadd.f32 %v4676_v36, %v466_v50  ;;  %v499_v8 = vld [vmem:[#allocation2 + $0x2f0] sm:$0xff] }
 0x187   : > { %2328 = vst.msk [vmem:[%s3734_s12 + $0x68] sm:$0xf] %vm2301_vm4, %v2199_v34  ;;  %v2263_v22 = vpack.c.bf16 %v2135_v19, %v2135_v19  ;;  %v2072_v38 = vmax.f32 %v1944_v37, 0.0  ;;  %v2008_v4 = vadd.f32 %v4625_v40, %v1876_v49  ;;  %v1908_v55 = vld [vmem:[#allocation2 + $0x3d8] sm:$0xff]  ;;  %v531_v9 = vld [vmem:[#allocation2 + $0x3f0] sm:$0xff] }
 0x188   : > { %2360 = vst.msk [vmem:[%s3734_s12 + $0xe8] sm:$0xf] %vm2301_vm4, %v2231_v41  ;;  %v2295_v59 = vpack.c.bf16 %v2167_v31, %v2167_v31  ;;  %v2104_v0 = vmax.f32 %v1976_v42, 0.0  ;;  %v2040_v5 = vadd.f32 %v4625_v40, %v1908_v55  ;;  %v1813_v58 = vld [vmem:[#allocation2 + $0xe0] sm:$0xff]  ;;  %v436_v51 = vld [vmem:[#allocation2 + $0xf8] sm:$0xff] }
 0x189   : > { %2392 = vst.msk [vmem:[%s3734_s12 + $0x168] sm:$0xf] %vm2301_vm4, %v2263_v22  ;;  %v2200_v29 = vpack.c.bf16 %v2072_v38, %v2072_v38  ;;  %v2136_v27 = vmax.f32 %v2008_v4, 0.0  ;;  %v1945_v47 = vadd.f32 %v4625_v40, %v1813_v58  ;;  %v500_v45 = vld [vmem:[#allocation2 + $0x2f8] sm:$0xff] }
 0x18a   : > { %v4681_v7 = vpop.f32.mrf.mxu2  ;;  %v1517_v18 = vpop.f32.mrf.mxu3  ;;  %2424 = vst.msk [vmem:[%s3734_s12 + $0x1e8] sm:$0xf] %vm2301_vm4, %v2295_v59  ;;  %v2232_v15 = vpack.c.bf16 %v2104_v0, %v2104_v0  ;;  %v2168_v54 = vmax.f32 %v2040_v5, 0.0 }
 0x18b   : > { %v1280_v30 = vpop.f32.mrf.mxu0  ;;  %2329 = vst.msk [vmem:[%s3734_s12 + $0x6c] sm:$0xf] %vm2301_vm4, %v2200_v29  ;;  %v2264_v57 = vpack.c.bf16 %v2136_v27, %v2136_v27  ;;  %v2073_v53 = vmax.f32 %v1945_v47, 0.0  ;;  %v1360_v11 = vpop.f32.mrf.mxu1  ;;  %v1618_v28 = vadd.f32 %v4681_v7, %v498_v20  ;;  %v1650_v63 = vadd.f32 %v1517_v18, %v530_v56 }
 0x18c   : > { %2361 = vst.msk [vmem:[%s3734_s12 + $0xec] sm:$0xf] %vm2301_vm4, %v2232_v15  ;;  %v2296_v39 = vpack.c.bf16 %v2168_v54, %v2168_v54  ;;  %v1555_v24 = vadd.f32 %v1280_v30, %v435_v61  ;;  %v1587_v1 = vadd.f32 %v1360_v11, %v467_v17 }
 0x18d   : > { %2393 = vst.msk [vmem:[%s3734_s12 + $0x16c] sm:$0xf] %vm2301_vm4, %v2264_v57  ;;  %v2201_v48 = vpack.c.bf16 %v2073_v53, %v2073_v53 }
 0x18e   : > { %2425 = vst.msk [vmem:[%s3734_s12 + $0x1ec] sm:$0xf] %vm2301_vm4, %v2296_v39 }
 0x18f   : > { %2330 = vst.msk [vmem:[%s3734_s12 + $0x70] sm:$0xf] %vm2301_vm4, %v2201_v48 }
 0x190   : > { %1714 = vst.msk [vmem:[#allocation2 + $0x1e0] sm:$0xff] %vm276_vm3, %v1585_v6 }
 0x191   : > { %1746 = vst.msk [vmem:[#allocation2 + $0x2e0] sm:$0xff] %vm276_vm3, %v1617_v33 }
 0x192   : > { %v1440_v46 = vpop.f32.mrf.mxu2  ;;  %1778 = vst.msk [vmem:[#allocation2 + $0x3e0] sm:$0xff] %vm276_vm3, %v1649_v43  ;;  %v1520_v14 = vpop.f32.mrf.mxu3 }
 0x193   : > { %1683 = vst.msk [vmem:[#allocation2 + $0xe8] sm:$0xff] %vm276_vm3, %v1554_v12  ;;  %v1282_v36 = vpop.f32.mrf.mxu0  ;;  %v1619_v52 = vadd.f32 %v1440_v46, %v499_v8  ;;  %v1362_v7 = vpop.f32.mrf.mxu1  ;;  %v1651_v13 = vadd.f32 %v1520_v14, %v531_v9  ;;  %v532_v14 = vld [vmem:[#allocation2 + $0x3f8] sm:$0xff] }
 0x194   : > { %1715 = vst.msk [vmem:[#allocation2 + $0x1e8] sm:$0xff] %vm276_vm3, %v1586_v16  ;;  %v1556_v60 = vadd.f32 %v1282_v36, %v436_v51  ;;  %v1588_v35 = vadd.f32 %v1362_v7, %v468_v21 }
 0x195   : > { %1747 = vst.msk [vmem:[#allocation2 + $0x2e8] sm:$0xff] %vm276_vm3, %v1618_v28 }
 0x196   : > { %1779 = vst.msk [vmem:[#allocation2 + $0x3e8] sm:$0xff] %vm276_vm3, %v1650_v63 }
 0x197   : > { %v1845_v3 = vld [vmem:[#allocation2 + $0x1e0] sm:$0xff]  ;;  %1684 = vst.msk [vmem:[#allocation2 + $0xf0] sm:$0xff] %vm276_vm3, %v1555_v24 }
 0x198   : > { %v1977_v32 = vadd.f32 %v4625_v40, %v1845_v3  ;;  %v1877_v23 = vld [vmem:[#allocation2 + $0x2e0] sm:$0xff]  ;;  %1716 = vst.msk [vmem:[#allocation2 + $0x1f0] sm:$0xff] %vm276_vm3, %v1587_v1 }
 0x199   : > { %v2009_v34 = vadd.f32 %v4625_v40, %v1877_v23  ;;  %v1909_v19 = vld [vmem:[#allocation2 + $0x3e0] sm:$0xff]  ;;  %1748 = vst.msk [vmem:[#allocation2 + $0x2f0] sm:$0xff] %vm276_vm3, %v1619_v52 }
 0x19a   : > { %v1442_v2 = vpop.f32.mrf.mxu2  ;;  %v2105_v44 = vmax.f32 %v1977_v32, 0.0  ;;  %v2041_v41 = vadd.f32 %v4625_v40, %v1909_v19  ;;  %v1814_v31 = vld [vmem:[#allocation2 + $0xe8] sm:$0xff]  ;;  %1780 = vst.msk [vmem:[#allocation2 + $0x3f0] sm:$0xff] %vm276_vm3, %v1651_v13  ;;  %v1522_v1 = vpop.f32.mrf.mxu3 }
 0x19b   : > { %v1620_v37 = vadd.f32 %v1442_v2, %v500_v45  ;;  %v2137_v42 = vmax.f32 %v2009_v34, 0.0  ;;  %v1946_v49 = vadd.f32 %v4625_v40, %v1814_v31  ;;  %v1846_v22 = vld [vmem:[#allocation2 + $0x1e8] sm:$0xff]  ;;  %1685 = vst.msk [vmem:[#allocation2 + $0xf8] sm:$0xff] %vm276_vm3, %v1556_v60  ;;  %v1652_v13 = vadd.f32 %v1522_v1, %v532_v14 }
 0x19c   : > { %v2233_v38 = vpack.c.bf16 %v2105_v44, %v2105_v44  ;;  %v2169_v4 = vmax.f32 %v2041_v41, 0.0  ;;  %v1978_v55 = vadd.f32 %v4625_v40, %v1846_v22  ;;  %v1878_v59 = vld [vmem:[#allocation2 + $0x2e8] sm:$0xff]  ;;  %1717 = vst.msk [vmem:[#allocation2 + $0x1f8] sm:$0xff] %vm276_vm3, %v1588_v35 }
 0x19d   : > { %v2265_v0 = vpack.c.bf16 %v2137_v42, %v2137_v42  ;;  %v2074_v5 = vmax.f32 %v1946_v49, 0.0  ;;  %v2010_v58 = vadd.f32 %v4625_v40, %v1878_v59  ;;  %v1910_v29 = vld [vmem:[#allocation2 + $0x3e8] sm:$0xff]  ;;  %1749 = vst.msk [vmem:[#allocation2 + $0x2f8] sm:$0xff] %vm276_vm3, %v1620_v37 }
 0x19e   : > { %2362 = vst.msk [vmem:[%s3734_s12 + $0xf0] sm:$0xf] %vm2301_vm4, %v2233_v38  ;;  %v2297_v27 = vpack.c.bf16 %v2169_v4, %v2169_v4  ;;  %v2106_v47 = vmax.f32 %v1978_v55, 0.0  ;;  %v2042_v25 = vadd.f32 %v4625_v40, %v1910_v29  ;;  %v1815_v18 = vld [vmem:[#allocation2 + $0xf0] sm:$0xff] }
 0x19f   : > { %2394 = vst.msk [vmem:[%s3734_s12 + $0x170] sm:$0xf] %vm2301_vm4, %v2265_v0  ;;  %v2202_v15 = vpack.c.bf16 %v2074_v5, %v2074_v5  ;;  %v2138_v54 = vmax.f32 %v2010_v58, 0.0  ;;  %v1947_v26 = vadd.f32 %v4625_v40, %v1815_v18  ;;  %v1847_v30 = vld [vmem:[#allocation2 + $0x1f0] sm:$0xff] }
 0x1a0   : > { %2426 = vst.msk [vmem:[%s3734_s12 + $0x1f0] sm:$0xf] %vm2301_vm4, %v2297_v27  ;;  %v2234_v57 = vpack.c.bf16 %v2106_v47, %v2106_v47  ;;  %v2170_v53 = vmax.f32 %v2042_v25, 0.0  ;;  %v1979_v62 = vadd.f32 %v4625_v40, %v1847_v30  ;;  %v1879_v11 = vld [vmem:[#allocation2 + $0x2f0] sm:$0xff] }
 0x1a1   : > { %2331 = vst.msk [vmem:[%s3734_s12 + $0x74] sm:$0xf] %vm2301_vm4, %v2202_v15  ;;  %v2266_v39 = vpack.c.bf16 %v2138_v54, %v2138_v54  ;;  %v2075_v6 = vmax.f32 %v1947_v26, 0.0  ;;  %v2011_v10 = vadd.f32 %v4625_v40, %v1879_v11  ;;  %v1911_v46 = vld [vmem:[#allocation2 + $0x3f0] sm:$0xff] }
 0x1a2   : > { %2363 = vst.msk [vmem:[%s3734_s12 + $0xf4] sm:$0xf] %vm2301_vm4, %v2234_v57  ;;  %v2298_v48 = vpack.c.bf16 %v2170_v53, %v2170_v53  ;;  %v2107_v33 = vmax.f32 %v1979_v62, 0.0  ;;  %v2043_v50 = vadd.f32 %v4625_v40, %v1911_v46  ;;  %v1816_v43 = vld [vmem:[#allocation2 + $0xf8] sm:$0xff] }
 0x1a3   : > { %2395 = vst.msk [vmem:[%s3734_s12 + $0x174] sm:$0xf] %vm2301_vm4, %v2266_v39  ;;  %v2203_v20 = vpack.c.bf16 %v2075_v6, %v2075_v6  ;;  %v2139_v12 = vmax.f32 %v2011_v10, 0.0  ;;  %v1948_v56 = vadd.f32 %v4625_v40, %v1816_v43  ;;  %v1848_v16 = vld [vmem:[#allocation2 + $0x1f8] sm:$0xff] }
 0x1a4   : > { %2427 = vst.msk [vmem:[%s3734_s12 + $0x1f4] sm:$0xf] %vm2301_vm4, %v2298_v48  ;;  %v2235_v61 = vpack.c.bf16 %v2107_v33, %v2107_v33  ;;  %v2171_v28 = vmax.f32 %v2043_v50, 0.0  ;;  %v1980_v17 = vadd.f32 %v4625_v40, %v1848_v16  ;;  %v1880_v63 = vld [vmem:[#allocation2 + $0x2f8] sm:$0xff] }
 0x1a5   : > { %2332 = vst.msk [vmem:[%s3734_s12 + $0x78] sm:$0xf] %vm2301_vm4, %v2203_v20  ;;  %v2267_v8 = vpack.c.bf16 %v2139_v12, %v2139_v12  ;;  %v2076_v24 = vmax.f32 %v1948_v56, 0.0  ;;  %v2012_v9 = vadd.f32 %v4625_v40, %v1880_v63 }
 0x1a6   : > { %2364 = vst.msk [vmem:[%s3734_s12 + $0xf8] sm:$0xf] %vm2301_vm4, %v2235_v61  ;;  %v2299_v51 = vpack.c.bf16 %v2171_v28, %v2171_v28  ;;  %v2108_v36 = vmax.f32 %v1980_v17, 0.0 }
 0x1a7   : > { %2396 = vst.msk [vmem:[%s3734_s12 + $0x178] sm:$0xf] %vm2301_vm4, %v2267_v8  ;;  %v2204_v52 = vpack.c.bf16 %v2076_v24, %v2076_v24  ;;  %v2140_v21 = vmax.f32 %v2012_v9, 0.0 }
 0x1a8   : > { %2428 = vst.msk [vmem:[%s3734_s12 + $0x1f8] sm:$0xf] %vm2301_vm4, %v2299_v51  ;;  %v2236_v7 = vpack.c.bf16 %v2108_v36, %v2108_v36 }
 0x1a9   : > { %2333 = vst.msk [vmem:[%s3734_s12 + $0x7c] sm:$0xf] %vm2301_vm4, %v2204_v52  ;;  %v2268_v45 = vpack.c.bf16 %v2140_v21, %v2140_v21 }
 0x1aa   : > { %2365 = vst.msk [vmem:[%s3734_s12 + $0xfc] sm:$0xf] %vm2301_vm4, %v2236_v7 }
 0x1ab   : > { %2397 = vst.msk [vmem:[%s3734_s12 + $0x17c] sm:$0xf] %vm2301_vm4, %v2268_v45 }
 0x1ac   : > { %1781 = vst.msk [vmem:[#allocation2 + $0x3f8] sm:$0xff] %vm276_vm3, %v1652_v13 }
 0x1b3   : > { %v1912_v2 = vld [vmem:[#allocation2 + $0x3f8] sm:$0xff] }
 0x1b4   : > { %v2044_v3 = vadd.f32 %v4625_v40, %v1912_v2 }
 0x1b6   : > { %v2172_v60 = vmax.f32 %v2044_v3, 0.0  ;;  %2436 = sbr.rel (!%p3514_p3) target bundleno = 507 (0x1fb), region = 44 }
 0x1b8   : > { %v2300_v32 = vpack.c.bf16 %v2172_v60, %v2172_v60 }
 0x1ba   : > { %2429 = vst.msk [vmem:[%s3734_s12 + $0x1fc] sm:$0xf] %vm2301_vm4, %v2300_v32 }
 0x1bb   : > { %s4946_s24 = smov (!%p2439_p9, %s2438_s24), 128 }
 0x1bc   : > { %s3157_s30 = sshll.u32 %s4946_s24, 2 }
 0x1bd   : > { %p3160_p10 = scmp.eq.s32.totalorder %s3157_s30, 0 }
 0x1be   : > { %s4795_s4 = sshrl.u32 (!%p3160_p10), %s4946_s24, 5 }
 0x1bf   : > { %2448 = sbr.rel (%p3160_p10) target bundleno = 507 (0x1fb), region = 48  ;;  %p3161_p11 = scmp.le.s32.totalorder (!%p3160_p10), %s4795_s4, 0 }
 0x1c4   : > { %2744 = sbr.rel (%p3161_p11) target bundleno = 490 (0x1ea), region = 126  ;;  %s4934_s14 = smov (!%p3161_p11), %s4789_s29 }
 0x1c5   : > { %s4935_s20 = smov (!%p3161_p11), %s3734_s12  ;;  %s4804_s27 = smov (!%p3161_p11), 0  }
 0x1c6   : > { %s4806_s5 = smov (!%p3161_p11), 0  }
 0x1c9 LB: >> { %v2465_v40 = vld [vmem:[%s3434_s20] sm:$0xf]  ;;  %v2467_v23 = vld [vmem:[%s3434_s20 + $0x4] sm:$0xf]  ;;  %v2469_v35 = vld [vmem:[%s3434_s20 + $0x8] sm:$0xf]  ;;  %s3442_s5 = sphi %s4806_s5, %s2459_s5   ;;  %s3438_s27 = sphi %s4804_s27, %s4938_s27   ;;  %s3434_s20 = sphi %s4935_s20, %s4937_s20   ;;  %s3430_s14 = sphi %s4934_s14, %s4936_s14  }
 0x1ca   : >> { %2466 = vst [vmem:[%s3430_s14] sm:$0xf] %v2465_v40  ;;  %v2471_v34 = vld [vmem:[%s3434_s20 + $0xc] sm:$0xf]  ;;  %v2473_v19 = vld [vmem:[%s3434_s20 + $0x10] sm:$0xf]  ;;  %s2529_s6 = sadd.s32 1, %s3438_s27 }
 0x1cb   : >> { %2468 = vst [vmem:[%s3430_s14 + $0x4] sm:$0xf] %v2467_v23  ;;  %v2475_v37 = vld [vmem:[%s3434_s20 + $0x14] sm:$0xf]  ;;  %v2477_v44 = vld [vmem:[%s3434_s20 + $0x18] sm:$0xf]  ;;  %p2530_p12 = scmp.ge.s32.totalorder %s2529_s6, %s4795_s4 }
 0x1cc   : >> { %2470 = vst [vmem:[%s3430_s14 + $0x8] sm:$0xf] %v2469_v35  ;;  %v2479_v41 = vld [vmem:[%s3434_s20 + $0x1c] sm:$0xf]  ;;  %v2481_v31 = vld [vmem:[%s3434_s20 + $0x20] sm:$0xf] }
 0x1cd   : >> { %2472 = vst [vmem:[%s3430_s14 + $0xc] sm:$0xf] %v2471_v34  ;;  %v2483_v42 = vld [vmem:[%s3434_s20 + $0x24] sm:$0xf]  ;;  %v2485_v49 = vld [vmem:[%s3434_s20 + $0x28] sm:$0xf] }
 0x1ce   : >> { %2474 = vst [vmem:[%s3430_s14 + $0x10] sm:$0xf] %v2473_v19  ;;  %v2487_v22 = vld [vmem:[%s3434_s20 + $0x2c] sm:$0xf]  ;;  %v2489_v38 = vld [vmem:[%s3434_s20 + $0x30] sm:$0xf] }
 0x1cf   : >> { %2476 = vst [vmem:[%s3430_s14 + $0x14] sm:$0xf] %v2475_v37  ;;  %v2491_v4 = vld [vmem:[%s3434_s20 + $0x34] sm:$0xf]  ;;  %v2493_v55 = vld [vmem:[%s3434_s20 + $0x38] sm:$0xf] }
 0x1d0   : >> { %2478 = vst [vmem:[%s3430_s14 + $0x18] sm:$0xf] %v2477_v44  ;;  %v2495_v59 = vld [vmem:[%s3434_s20 + $0x3c] sm:$0xf]  ;;  %v2497_v0 = vld [vmem:[%s3434_s20 + $0x40] sm:$0xf] }
 0x1d1   : >> { %2480 = vst [vmem:[%s3430_s14 + $0x1c] sm:$0xf] %v2479_v41  ;;  %v2499_v5 = vld [vmem:[%s3434_s20 + $0x44] sm:$0xf]  ;;  %s4948_s6 = smov (%p2530_p12, %s2529_s6), 0  ;;  %s2459_s5 = sadd.s32 1, %s3442_s5  }
 0x1d2   : >> { %2482 = vst [vmem:[%s3430_s14 + $0x20] sm:$0xf] %v2481_v31  ;;  %v2501_v58 = vld [vmem:[%s3434_s20 + $0x48] sm:$0xf]  ;;  %v2503_v29 = vld [vmem:[%s3434_s20 + $0x4c] sm:$0xf]  ;;  %p2458_p13 = scmp.ge.s32.totalorder %s2459_s5, %s4795_s4  ;;  %s4938_s27 = smov %s4948_s6 }
 0x1d3   : >> { %2484 = vst [vmem:[%s3430_s14 + $0x24] sm:$0xf] %v2483_v42  ;;  %s3162_s7 = sshll.u32 %s4948_s6, 7  ;;  %v2505_v27 = vld [vmem:[%s3434_s20 + $0x50] sm:$0xf] }
 0x1d4   : >> { %2486 = vst [vmem:[%s3430_s14 + $0x28] sm:$0xf] %v2485_v49  ;;  %s4865_s8 = scalar_lea.vmem %s3734_s12, %s3162_s7 [#allocation3]   ;;  %s2535_s9 = scalar_lea.vmem %s4789_s29, %s3162_s7   ;;  %v2507_v47 = vld [vmem:[%s3434_s20 + $0x54] sm:$0xf]  ;;  %v2509_v25 = vld [vmem:[%s3434_s20 + $0x58] sm:$0xf] }
 0x1d5   : >> { %2488 = vst [vmem:[%s3430_s14 + $0x2c] sm:$0xf] %v2487_v22  ;;  %v2511_v18 = vld [vmem:[%s3434_s20 + $0x5c] sm:$0xf]  ;;  %v2513_v15 = vld [vmem:[%s3434_s20 + $0x60] sm:$0xf] }
 0x1d6   : >> { %2490 = vst [vmem:[%s3430_s14 + $0x30] sm:$0xf] %v2489_v38  ;;  %v2515_v54 = vld [vmem:[%s3434_s20 + $0x64] sm:$0xf]  ;;  %v2517_v26 = vld [vmem:[%s3434_s20 + $0x68] sm:$0xf] }
 0x1d7   : >> { %2492 = vst [vmem:[%s3430_s14 + $0x34] sm:$0xf] %v2491_v4  ;;  %v2519_v30 = vld [vmem:[%s3434_s20 + $0x6c] sm:$0xf]  ;;  %v2521_v57 = vld [vmem:[%s3434_s20 + $0x70] sm:$0xf] }
 0x1d8   : >> { %2494 = vst [vmem:[%s3430_s14 + $0x38] sm:$0xf] %v2493_v55  ;;  %v2523_v53 = vld [vmem:[%s3434_s20 + $0x74] sm:$0xf]  ;;  %v2525_v62 = vld [vmem:[%s3434_s20 + $0x78] sm:$0xf] }
 0x1d9   : >> { %2496 = vst [vmem:[%s3430_s14 + $0x3c] sm:$0xf] %v2495_v59  ;;  %v2527_v11 = vld [vmem:[%s3434_s20 + $0x7c] sm:$0xf]  ;;  %s4937_s20 = smov %s4865_s8 }
 0x1da   : >> { %2498 = vst [vmem:[%s3430_s14 + $0x40] sm:$0xf] %v2497_v0 }
 0x1db   : >> { %2500 = vst [vmem:[%s3430_s14 + $0x44] sm:$0xf] %v2499_v5 }
 0x1dc   : >> { %2502 = vst [vmem:[%s3430_s14 + $0x48] sm:$0xf] %v2501_v58 }
 0x1dd   : >> { %2504 = vst [vmem:[%s3430_s14 + $0x4c] sm:$0xf] %v2503_v29 }
 0x1de   : >> { %2506 = vst [vmem:[%s3430_s14 + $0x50] sm:$0xf] %v2505_v27 }
 0x1df   : >> { %2508 = vst [vmem:[%s3430_s14 + $0x54] sm:$0xf] %v2507_v47 }
 0x1e0   : >> { %2510 = vst [vmem:[%s3430_s14 + $0x58] sm:$0xf] %v2509_v25 }
 0x1e1   : >> { %2512 = vst [vmem:[%s3430_s14 + $0x5c] sm:$0xf] %v2511_v18 }
 0x1e2   : >> { %2514 = vst [vmem:[%s3430_s14 + $0x60] sm:$0xf] %v2513_v15 }
 0x1e3   : >> { %2516 = vst [vmem:[%s3430_s14 + $0x64] sm:$0xf] %v2515_v54 }
 0x1e4   : >> { %2518 = vst [vmem:[%s3430_s14 + $0x68] sm:$0xf] %v2517_v26 }
 0x1e5   : >> { %2520 = vst [vmem:[%s3430_s14 + $0x6c] sm:$0xf] %v2519_v30  ;;  %2461 = sbr.rel (!%p2458_p13) target bundleno = 457 (0x1c9), region = 132 }
 0x1e6   : >> { %2522 = vst [vmem:[%s3430_s14 + $0x70] sm:$0xf] %v2521_v57 }
 0x1e7   : >> { %2524 = vst [vmem:[%s3430_s14 + $0x74] sm:$0xf] %v2523_v53 }
 0x1e8   : >> { %2526 = vst [vmem:[%s3430_s14 + $0x78] sm:$0xf] %v2525_v62 }
 0x1e9   : >> { %2528 = vst [vmem:[%s3430_s14 + $0x7c] sm:$0xf] %v2527_v11  ;;  %s4936_s14 = smov %s2535_s9 }
 0x1ea PF: > { %s4906_s10 = sand.u32 31, %s4946_s24   ;;  %s3239_s11 = sshll.u32 %s4795_s4, 7 }
 0x1eb   : > { %s2540_s17 = scalar_lea.vmem %s3734_s12, %s3239_s11 [#allocation3]   ;;  %s2542_s19 = scalar_lea.vmem %s4789_s29, %s3239_s11  }
 0x1ec   : > { %p3167_p0 = scmp.le.s32.totalorder %s4906_s10, 0 }
 0x1ed   : > { %s3444_s21 = smov (!%p3167_p0), %s2542_s19   ;;  %s3448_s23 = smov (!%p3167_p0), %s2540_s17  }
 0x1ee   : > { %2758 = sbr.rel (%p3167_p0) target bundleno = 507 (0x1fb), region = 137  ;;  %s3452_s25 = smov (!%p3167_p0), 0  }
 0x1ef   : > { %s3456_s26 = smov (!%p3167_p0), 0  }
 0x1f3 LB: >> { %v2552_v39 = vld [vmem:[%s3450_s23] sm:$0xf]  ;;  %s2554_s24 = sadd.s32 1, %s3454_s25  ;;  %s2546_s26 = sadd.s32 1, %s3458_s26   ;;  %s3458_s26 = sphi %s3456_s26, %s2546_s26   ;;  %s3454_s25 = sphi %s3452_s25, %s3453_s25   ;;  %s3450_s23 = sphi %s3448_s23, %s2559_s23   ;;  %s3446_s21 = sphi %s3444_s21, %s2560_s21  }
 0x1f4   : >> { %2553 = vst [vmem:[%s3446_s21] sm:$0xf] %v2552_v39  ;;  %p2555_p1 = scmp.ge.s32.totalorder %s2554_s24, %s4906_s10  ;;  %p2545_p2 = scmp.ge.s32.totalorder %s2546_s26, %s4906_s10 }
 0x1f6   : >> { %s4950_s24 = smov (%p2555_p1, %s2554_s24), 0  ;;  %2548 = sbr.rel (!%p2545_p2) target bundleno = 499 (0x1f3), region = 143 }
 0x1f7   : >> { %s3168_s12 = sshll.u32 %s4950_s24, 2  ;;  %s3453_s25 = smov %s4950_s24  }
 0x1f8   : >> { %s2559_s23 = scalar_lea.vmem %s2540_s17, %s3168_s12 [#allocation3]   ;;  %s2560_s21 = scalar_lea.vmem %s2542_s19, %s3168_s12  }
 0x1fb PF: > { %s13_s16 = sadd.s32 1, %s3426_s16   ;;  %s4939_s12 = smov %s3414_s13 }
 0x1fc   : > { %p10_p3 = scmp.ge.s32.totalorder %s13_s16, 90   ;;  %s4940_s13 = smov %s3523_s22 }
 0x1fd   : > { %s4941_s14 = smov %s3422_s15  ;;  %s4942_s15 = smov %s4944_s18 }
 0x1fe   :  { %12 = sbr.rel (!%p10_p3) target bundleno = 3 (0x3), region = 154 }

</bundles_post_ra>
